<compile_context>
chip_gen: v7x
topology: tpu7x:2x2x1
jax: 0.10.0
libtpu: 0.0.40
codegen_flags: <defaults>
</compile_context>

<pallas_src>
import functools

import jax
import jax.numpy as jnp
from jax.experimental import pallas as pl
from jax.experimental.pallas import tpu as pltpu


def _layernorm(x, gamma, beta, eps=1e-6):
    mean = jnp.mean(x, axis=-1, keepdims=True)
    var = jnp.mean(jnp.square(x - mean), axis=-1, keepdims=True)
    return (x - mean) * jax.lax.rsqrt(var + eps) * gamma + beta


def _pick_tile(s, cap=256):
    for t in (cap, 128, 64, 32, 16, 8):
        if t <= s and s % t == 0:
            return t
    return s


def _attn_block_kernel(xf_ref, xt_ref, g1_ref, b1_ref, w_in_ref, b_in_ref,
                       w_out_ref, b_out_ref, g2_ref, b2_ref,
                       w_mlp_ref, b_mlp_ref, o_ref,
                       q_ref, k_ref, v_ref, m_ref, l_ref, acc_ref,
                       *, heads, tq, tk):
    qi = pl.program_id(1)
    ki = pl.program_id(2)
    nk = pl.num_programs(2)

    S = xf_ref.shape[1]
    E = xf_ref.shape[2]
    hd = E // heads
    scale = 1.0 / (float(hd) ** 0.5)

    # ---- once per batch element: LN1 + packed QKV projection -> head-major
    # bf16 scratch (hoisted out of the attention hot loop). -----------------
    @pl.when((qi == 0) & (ki == 0))
    def _():
        x_full = xf_ref[0].astype(jnp.float32)                    # (S, E)
        x_ln = _layernorm(x_full, g1_ref[0], b1_ref[0])           # f32 stats
        qkv = jnp.dot(x_ln.astype(jnp.bfloat16), w_in_ref[...],   # (S, 3E) f32
                      preferred_element_type=jnp.float32) + b_in_ref[0]
        # Fold the attention scale into Q while still in f32 (single rounding
        # to bf16 afterwards), then drop everything to bf16 for the MXU.
        q_b = (qkv[:, :E] * scale).astype(jnp.bfloat16)           # (S, E)
        kv_b = qkv[:, E:].astype(jnp.bfloat16)                    # (S, 2E)
        # Head split happens once per batch element (init only); with
        # lane-aligned head_dim this is a pure layout change.
        for h in range(heads):                                    # static loop
            q_ref[h] = q_b[:, h * hd:(h + 1) * hd]
            k_ref[h] = kv_b[:, h * hd:(h + 1) * hd]
            v_ref[h] = kv_b[:, E + h * hd:E + (h + 1) * hd]

    # ---- init online-softmax state at the first KV tile of each q tile ----
    @pl.when(ki == 0)
    def _():
        m_ref[...] = jnp.full(m_ref.shape, -jnp.inf, dtype=m_ref.dtype)
        l_ref[...] = jnp.zeros(l_ref.shape, dtype=l_ref.dtype)
        acc_ref[...] = jnp.zeros(acc_ref.shape, dtype=acc_ref.dtype)

    q_start = pl.multiple_of(qi * tq, tq)
    k_start = pl.multiple_of(ki * tk, tk)
    q = q_ref[:, pl.ds(q_start, tq), :]                           # (H, tq, hd) bf16
    k = k_ref[:, pl.ds(k_start, tk), :]                           # (H, tk, hd) bf16
    v = v_ref[:, pl.ds(k_start, tk), :]                           # (H, tk, hd) bf16

    # Batched-over-heads QK^T (contraction folded into the MXU, no k.T).
    # Scale already folded into Q -> no per-step multiply of the score tile.
    s = jnp.einsum("hqd,hkd->hqk", q, k,
                   preferred_element_type=jnp.float32)            # (H, tq, tk)

    m_prev = m_ref[...]
    m_new = jnp.maximum(m_prev, jnp.max(s, axis=-1, keepdims=True))
    alpha = jnp.exp(m_prev - m_new)                               # EUP
    p = jnp.exp(s - m_new)                                        # EUP
    l_ref[...] = alpha * l_ref[...] + jnp.sum(p, axis=-1, keepdims=True)
    acc_ref[...] = alpha * acc_ref[...] + jnp.einsum(
        "hqk,hkd->hqd", p.astype(jnp.bfloat16), v,
        preferred_element_type=jnp.float32)
    m_ref[...] = m_new

    # ---- last KV tile: finalize softmax, out-proj, residual, LN2, MLP -----
    @pl.when(ki == nk - 1)
    def _():
        attn = acc_ref[...] * pl.reciprocal(l_ref[...], approx=True)  # (H,tq,hd)
        # Per-head out-projection with (H, hd, E) weight + f32 sum over heads:
        # no concat / transpose of the attention output.
        proj = jnp.einsum("hqd,hde->hqe", attn.astype(jnp.bfloat16),
                          w_out_ref[...],
                          preferred_element_type=jnp.float32)
        proj = jnp.sum(proj, axis=0) + b_out_ref[0]                   # (tq, E)

        x_tile = xt_ref[0].astype(jnp.float32)                        # (tq, E)
        x_res = proj + x_tile
        y = _layernorm(x_res, g2_ref[0], b2_ref[0])
        y = jnp.dot(y.astype(jnp.bfloat16), w_mlp_ref[...],
                    preferred_element_type=jnp.float32) + b_mlp_ref[0]
        o_ref[0] = (x_res + y).astype(o_ref.dtype)


def self_attention_block(x, params, heads):
    B, S, E = x.shape
    assert E % heads == 0, "embed_dim must be divisible by heads"
    hd = E // heads
    mlp_dim = params["w_mlp"].shape[0]
    assert mlp_dim == E, "final residual x + y requires mlp_dim == embed_dim"

    tq = _pick_tile(S)
    tk = _pick_tile(S)
    nq, nk = S // tq, S // tk

    bf = jnp.bfloat16
    # Host-side one-time layout prep: pre-transposed bf16 weights so the MXU
    # is fed directly (no in-kernel transposes, half the VMEM footprint).
    w_in_t = params["w_in"].T.astype(bf)                           # (E, 3E)
    w_out_h = params["w_out"].T.reshape(heads, hd, E).astype(bf)   # (H, hd, E)
    w_mlp_t = params["w_mlp"].T.astype(bf)                         # (E, mlp)

    def const_spec(shape):
        zeros = (0,) * len(shape)
        return pl.BlockSpec(shape, lambda b, q, k: zeros)

    kernel = functools.partial(_attn_block_kernel, heads=heads, tq=tq, tk=tk)

    return pl.pallas_call(
        kernel,
        out_shape=jax.ShapeDtypeStruct((B, S, E), x.dtype),
        grid=(B, nq, nk),
        in_specs=[
            pl.BlockSpec((1, S, E), lambda b, q, k: (b, 0, 0)),    # x, full seq
            pl.BlockSpec((1, tq, E), lambda b, q, k: (b, q, 0)),   # x, q tile
            const_spec((1, E)), const_spec((1, E)),                # ln1 g/b
            const_spec((E, 3 * E)), const_spec((1, 3 * E)),        # in_proj W/b
            const_spec((heads, hd, E)), const_spec((1, E)),        # out_proj W/b
            const_spec((1, E)), const_spec((1, E)),                # ln2 g/b
            const_spec((E, mlp_dim)), const_spec((1, mlp_dim)),    # mlp W/b
        ],
        out_specs=pl.BlockSpec((1, tq, E), lambda b, q, k: (b, q, 0)),
        scratch_shapes=[
            pltpu.VMEM((heads, S, hd), bf),            # Q (head-major, scaled)
            pltpu.VMEM((heads, S, hd), bf),            # K
            pltpu.VMEM((heads, S, hd), bf),            # V
            pltpu.VMEM((heads, tq, 1), jnp.float32),   # online-softmax m
            pltpu.VMEM((heads, tq, 1), jnp.float32),   # online-softmax l
            pltpu.VMEM((heads, tq, hd), jnp.float32),  # attention accumulator
        ],
        compiler_params=pltpu.CompilerParams(
            dimension_semantics=("parallel", "arbitrary", "arbitrary"),
            vmem_limit_bytes=64 * 1024 * 1024),
    )(x, x, params["g1"], params["b1"], w_in_t, params["b_in"],
      w_out_h, params["b_out"], params["g2"], params["b2"],
      w_mlp_t, params["b_mlp"])


def ref_forward(x_in, p, heads):
    """Pure-JAX reference mirroring the PyTorch forward (bf16 MXU emulated)."""
    def ln(x, g, b):
        m = jnp.mean(x, -1, keepdims=True)
        v = jnp.mean((x - m) ** 2, -1, keepdims=True)
        return (x - m) * jax.lax.rsqrt(v + 1e-6) * g + b

    bf = jnp.bfloat16
    B, S, E = x_in.shape
    hd = E // heads
    x = ln(x_in, p["g1"][0], p["b1"][0])
    qkv = jnp.einsum("bse,ef->bsf", x.astype(bf), p["w_in"].T.astype(bf),
                     preferred_element_type=jnp.float32) + p["b_in"][0]
    qkv = qkv.astype(bf).astype(jnp.float32)
    q, k, v = qkv[..., :E], qkv[..., E:2 * E], qkv[..., 2 * E:]
    q = q.reshape(B, S, heads, hd).transpose(0, 2, 1, 3)
    k = k.reshape(B, S, heads, hd).transpose(0, 2, 1, 3)
    v = v.reshape(B, S, heads, hd).transpose(0, 2, 1, 3)
    s = jnp.einsum("bhqd,bhkd->bhqk", q.astype(bf), k.astype(bf),
                   preferred_element_type=jnp.float32) / (float(hd) ** 0.5)
    a = jax.nn.softmax(s, axis=-1)
    o = jnp.einsum("bhqk,bhkd->bhqd", a.astype(bf), v.astype(bf),
                   preferred_element_type=jnp.float32)
    o = o.transpose(0, 2, 1, 3).reshape(B, S, E)
    o = jnp.einsum("bse,ef->bsf", o.astype(bf), p["w_out"].T.astype(bf),
                   preferred_element_type=jnp.float32) + p["b_out"][0]
    xr = o + x_in
    y = ln(xr, p["g2"][0], p["b2"][0])
    y = jnp.einsum("bse,ef->bsf", y.astype(bf), p["w_mlp"].T.astype(bf),
                   preferred_element_type=jnp.float32) + p["b_mlp"][0]
    return xr + y


if __name__ == "__main__":
    B, S, E, heads = 2, 8, 32, 4
    mlp_dim = E  # final residual x + y requires mlp_dim == embed_dim

    key = jax.random.PRNGKey(0)
    ks = jax.random.split(key, 11)

    params = {
        "g1":    1.0 + 0.1 * jax.random.normal(ks[0], (1, E), jnp.float32),
        "b1":    0.1 * jax.random.normal(ks[1], (1, E), jnp.float32),
        "w_in":  0.1 * jax.random.normal(ks[2], (3 * E, E), jnp.float32),
        "b_in":  0.1 * jax.random.normal(ks[3], (1, 3 * E), jnp.float32),
        "w_out": 0.1 * jax.random.normal(ks[4], (E, E), jnp.float32),
        "b_out": 0.1 * jax.random.normal(ks[5], (1, E), jnp.float32),
        "g2":    1.0 + 0.1 * jax.random.normal(ks[6], (1, E), jnp.float32),
        "b2":    0.1 * jax.random.normal(ks[7], (1, E), jnp.float32),
        "w_mlp": 0.1 * jax.random.normal(ks[8], (mlp_dim, E), jnp.float32),
        "b_mlp": 0.1 * jax.random.normal(ks[9], (1, mlp_dim), jnp.float32),
    }
    x = jax.random.normal(ks[10], (B, S, E), jnp.float32)

    out = jax.block_until_ready(self_attention_block(x, params, heads))
    ref = jax.block_until_ready(ref_forward(x, params, heads))

    assert out.shape == (B, S, E)
    max_err = jnp.max(jnp.abs(out - ref))
    assert jnp.allclose(out, ref, rtol=2e-2, atol=2e-2), (
        f"max abs err {max_err}")

    print("KERNEL_OK")
</pallas_src>

<mosaic_0001>
module attributes {stable_mosaic.version = 11 : i64} {
  func.func @_attn_block_kernel(%arg0: i32, %arg1: i32, %arg2: i32, %arg3: memref<1x8x32xf32, #tpu.memory_space<vmem>>, %arg4: memref<1x8x32xf32, #tpu.memory_space<vmem>>, %arg5: memref<1x32xf32, #tpu.memory_space<vmem>>, %arg6: memref<1x32xf32, #tpu.memory_space<vmem>>, %arg7: memref<32x96xbf16, #tpu.memory_space<vmem>>, %arg8: memref<1x96xf32, #tpu.memory_space<vmem>>, %arg9: memref<4x8x32xbf16, #tpu.memory_space<vmem>>, %arg10: memref<1x32xf32, #tpu.memory_space<vmem>>, %arg11: memref<1x32xf32, #tpu.memory_space<vmem>>, %arg12: memref<1x32xf32, #tpu.memory_space<vmem>>, %arg13: memref<32x32xbf16, #tpu.memory_space<vmem>>, %arg14: memref<1x32xf32, #tpu.memory_space<vmem>>, %arg15: memref<1x8x32xf32, #tpu.memory_space<vmem>>, %arg16: memref<4x8x8xbf16, #tpu.memory_space<vmem>>, %arg17: memref<4x8x8xbf16, #tpu.memory_space<vmem>>, %arg18: memref<4x8x8xbf16, #tpu.memory_space<vmem>>, %arg19: memref<4x8x1xf32, #tpu.memory_space<vmem>>, %arg20: memref<4x8x1xf32, #tpu.memory_space<vmem>>, %arg21: memref<4x8x8xf32, #tpu.memory_space<vmem>>) attributes {dimension_semantics = [#tpu.dimension_semantics<parallel>, #tpu.dimension_semantics<arbitrary>, #tpu.dimension_semantics<arbitrary>], iteration_bounds = array<i64: 2, 1, 1>, scalar_prefetch = 0 : i64, scratch_operands = 6 : i64, tpu.core_type = #tpu.core_type<tc>, window_params = [{transform_indices = @transform_0, window_bounds = array<i64: 1, 8, 32>}, {transform_indices = @transform_1, window_bounds = array<i64: 1, 8, 32>}, {pipeline_mode = #tpu.pipeline_mode<synchronous>, transform_indices = @transform_2, window_bounds = array<i64: 1, 32>}, {pipeline_mode = #tpu.pipeline_mode<synchronous>, transform_indices = @transform_3, window_bounds = array<i64: 1, 32>}, {pipeline_mode = #tpu.pipeline_mode<synchronous>, transform_indices = @transform_4, window_bounds = array<i64: 32, 96>}, {pipeline_mode = #tpu.pipeline_mode<synchronous>, transform_indices = @transform_5, window_bounds = array<i64: 1, 96>}, {pipeline_mode = #tpu.pipeline_mode<synchronous>, transform_indices = @transform_6, window_bounds = array<i64: 4, 8, 32>}, {pipeline_mode = #tpu.pipeline_mode<synchronous>, transform_indices = @transform_7, window_bounds = array<i64: 1, 32>}, {pipeline_mode = #tpu.pipeline_mode<synchronous>, transform_indices = @transform_8, window_bounds = array<i64: 1, 32>}, {pipeline_mode = #tpu.pipeline_mode<synchronous>, transform_indices = @transform_9, window_bounds = array<i64: 1, 32>}, {pipeline_mode = #tpu.pipeline_mode<synchronous>, transform_indices = @transform_10, window_bounds = array<i64: 32, 32>}, {pipeline_mode = #tpu.pipeline_mode<synchronous>, transform_indices = @transform_11, window_bounds = array<i64: 1, 32>}, {transform_indices = @transform_12, window_bounds = array<i64: 1, 8, 32>}]} {
    %c0_i32 = arith.constant 0 : i32
    %0 = arith.cmpi eq, %arg1, %c0_i32 : i32
    %c0_i32_0 = arith.constant 0 : i32
    %1 = arith.cmpi eq, %arg2, %c0_i32_0 : i32
    %2 = arith.andi %0, %1 : i1
    %3 = arith.extui %2 : i1 to i32
    %c0_i32_1 = arith.constant 0 : i32
    %4 = arith.cmpi ne, %3, %c0_i32_1 : i32
    scf.if %4 {
      %c0_33 = arith.constant 0 : index
      %c0_34 = arith.constant 0 : index
      %c0_35 = arith.constant 0 : index
      %45 = vector.load %arg3[%c0_33, %c0_34, %c0_35] : memref<1x8x32xf32, #tpu.memory_space<vmem>>, vector<1x8x32xf32>
      %46 = vector.shape_cast %45 : vector<1x8x32xf32> to vector<8x32xf32>
      %c0_36 = arith.constant 0 : index
      %c0_37 = arith.constant 0 : index
      %47 = vector.load %arg5[%c0_36, %c0_37] : memref<1x32xf32, #tpu.memory_space<vmem>>, vector<1x32xf32>
      %48 = vector.shape_cast %47 : vector<1x32xf32> to vector<32xf32>
      %c0_38 = arith.constant 0 : index
      %c0_39 = arith.constant 0 : index
      %49 = vector.load %arg6[%c0_38, %c0_39] : memref<1x32xf32, #tpu.memory_space<vmem>>, vector<1x32xf32>
      %50 = vector.shape_cast %49 : vector<1x32xf32> to vector<32xf32>
      %cst_40 = arith.constant dense<0.000000e+00> : vector<8xf32>
      %51 = vector.multi_reduction <add>, %46, %cst_40 [1] : vector<8x32xf32> to vector<8xf32>
      %52 = vector.shape_cast %51 : vector<8xf32> to vector<8x1xf32>
      %cst_41 = arith.constant 3.200000e+01 : f32
      %53 = vector.broadcast %cst_41 : f32 to vector<8x1xf32>
      %54 = arith.divf %52, %53 : vector<8x1xf32>
      %55 = vector.broadcast %54 : vector<8x1xf32> to vector<8x32xf32>
      %56 = arith.subf %46, %55 : vector<8x32xf32>
      %57 = arith.mulf %56, %56 : vector<8x32xf32>
      %cst_42 = arith.constant dense<0.000000e+00> : vector<8xf32>
      %58 = vector.multi_reduction <add>, %57, %cst_42 [1] : vector<8x32xf32> to vector<8xf32>
      %59 = vector.shape_cast %58 : vector<8xf32> to vector<8x1xf32>
      %cst_43 = arith.constant 3.200000e+01 : f32
      %60 = vector.broadcast %cst_43 : f32 to vector<8x1xf32>
      %61 = arith.divf %59, %60 : vector<8x1xf32>
      %62 = vector.broadcast %54 : vector<8x1xf32> to vector<8x32xf32>
      %63 = arith.subf %46, %62 : vector<8x32xf32>
      %cst_44 = arith.constant 9.99999997E-7 : f32
      %64 = vector.broadcast %cst_44 : f32 to vector<8x1xf32>
      %65 = arith.addf %61, %64 : vector<8x1xf32>
      %66 = math.rsqrt %65 : vector<8x1xf32>
      %67 = vector.broadcast %66 : vector<8x1xf32> to vector<8x32xf32>
      %68 = arith.mulf %63, %67 : vector<8x32xf32>
      %69 = vector.shape_cast %48 : vector<32xf32> to vector<1x32xf32>
      %70 = vector.broadcast %69 : vector<1x32xf32> to vector<8x32xf32>
      %71 = arith.mulf %68, %70 : vector<8x32xf32>
      %72 = vector.shape_cast %50 : vector<32xf32> to vector<1x32xf32>
      %73 = vector.broadcast %72 : vector<1x32xf32> to vector<8x32xf32>
      %74 = arith.addf %71, %73 : vector<8x32xf32>
      %75 = arith.truncf %74 : vector<8x32xf32> to vector<8x32xbf16>
      %c0_45 = arith.constant 0 : index
      %c0_46 = arith.constant 0 : index
      %76 = vector.load %arg7[%c0_45, %c0_46] : memref<32x96xbf16, #tpu.memory_space<vmem>>, vector<32x96xbf16>
      %cst_47 = arith.constant dense<0.000000e+00> : vector<8x96xf32>
      %77 = tpu.matmul %75, %76, %cst_47 {dimension_numbers = #tpu.dot_dimension_numbers<[1], [0], [0], [1], [0, 0, 1, 1], [], []>} : vector<8x32xbf16>, vector<32x96xbf16>, vector<8x96xf32> -> vector<8x96xf32>
      %c0_48 = arith.constant 0 : index
      %c0_49 = arith.constant 0 : index
      %78 = vector.load %arg8[%c0_48, %c0_49] : memref<1x96xf32, #tpu.memory_space<vmem>>, vector<1x96xf32>
      %79 = vector.shape_cast %78 : vector<1x96xf32> to vector<96xf32>
      %80 = vector.shape_cast %79 : vector<96xf32> to vector<1x96xf32>
      %81 = vector.broadcast %80 : vector<1x96xf32> to vector<8x96xf32>
      %82 = arith.addf %77, %81 : vector<8x96xf32>
      %83 = vector.extract_strided_slice %82 {offsets = [0, 0], sizes = [8, 32], strides = [1, 1]} : vector<8x96xf32> to vector<8x32xf32>
      %cst_50 = arith.constant 0.353553385 : f32
      %84 = vector.broadcast %cst_50 : f32 to vector<8x32xf32>
      %85 = arith.mulf %83, %84 : vector<8x32xf32>
      %86 = arith.truncf %85 : vector<8x32xf32> to vector<8x32xbf16>
      %87 = vector.extract_strided_slice %82 {offsets = [0, 32], sizes = [8, 64], strides = [1, 1]} : vector<8x96xf32> to vector<8x64xf32>
      %88 = arith.truncf %87 : vector<8x64xf32> to vector<8x64xbf16>
      %89 = vector.extract_strided_slice %86 {offsets = [0, 0], sizes = [8, 8], strides = [1, 1]} : vector<8x32xbf16> to vector<8x8xbf16>
      %c0_51 = arith.constant 0 : index
      %c0_52 = arith.constant 0 : index
      %c0_53 = arith.constant 0 : index
      %90 = vector.load %arg16[%c0_51, %c0_52, %c0_53] : memref<4x8x8xbf16, #tpu.memory_space<vmem>>, vector<1x8x8xbf16>
      %91 = vector.shape_cast %90 : vector<1x8x8xbf16> to vector<8x8xbf16>
      %92 = vector.shape_cast %89 : vector<8x8xbf16> to vector<1x8x8xbf16>
      tpu.vector_store %arg16[%c0_51, %c0_52, %c0_53], %92 {strides = array<i32>} : memref<4x8x8xbf16, #tpu.memory_space<vmem>>, vector<1x8x8xbf16>,
      %93 = vector.extract_strided_slice %88 {offsets = [0, 0], sizes = [8, 8], strides = [1, 1]} : vector<8x64xbf16> to vector<8x8xbf16>
      %c0_54 = arith.constant 0 : index
      %c0_55 = arith.constant 0 : index
      %c0_56 = arith.constant 0 : index
      %94 = vector.load %arg17[%c0_54, %c0_55, %c0_56] : memref<4x8x8xbf16, #tpu.memory_space<vmem>>, vector<1x8x8xbf16>
      %95 = vector.shape_cast %94 : vector<1x8x8xbf16> to vector<8x8xbf16>
      %96 = vector.shape_cast %93 : vector<8x8xbf16> to vector<1x8x8xbf16>
      tpu.vector_store %arg17[%c0_54, %c0_55, %c0_56], %96 {strides = array<i32>} : memref<4x8x8xbf16, #tpu.memory_space<vmem>>, vector<1x8x8xbf16>,
      %97 = vector.extract_strided_slice %88 {offsets = [0, 32], sizes = [8, 8], strides = [1, 1]} : vector<8x64xbf16> to vector<8x8xbf16>
      %c0_57 = arith.constant 0 : index
      %c0_58 = arith.constant 0 : index
      %c0_59 = arith.constant 0 : index
      %98 = vector.load %arg18[%c0_57, %c0_58, %c0_59] : memref<4x8x8xbf16, #tpu.memory_space<vmem>>, vector<1x8x8xbf16>
      %99 = vector.shape_cast %98 : vector<1x8x8xbf16> to vector<8x8xbf16>
      %100 = vector.shape_cast %97 : vector<8x8xbf16> to vector<1x8x8xbf16>
      tpu.vector_store %arg18[%c0_57, %c0_58, %c0_59], %100 {strides = array<i32>} : memref<4x8x8xbf16, #tpu.memory_space<vmem>>, vector<1x8x8xbf16>,
      %101 = vector.extract_strided_slice %86 {offsets = [0, 8], sizes = [8, 8], strides = [1, 1]} : vector<8x32xbf16> to vector<8x8xbf16>
      %c1 = arith.constant 1 : index
      %c0_60 = arith.constant 0 : index
      %c0_61 = arith.constant 0 : index
      %102 = vector.load %arg16[%c1, %c0_60, %c0_61] : memref<4x8x8xbf16, #tpu.memory_space<vmem>>, vector<1x8x8xbf16>
      %103 = vector.shape_cast %102 : vector<1x8x8xbf16> to vector<8x8xbf16>
      %104 = vector.shape_cast %101 : vector<8x8xbf16> to vector<1x8x8xbf16>
      tpu.vector_store %arg16[%c1, %c0_60, %c0_61], %104 {strides = array<i32>} : memref<4x8x8xbf16, #tpu.memory_space<vmem>>, vector<1x8x8xbf16>,
      %105 = vector.extract_strided_slice %88 {offsets = [0, 8], sizes = [8, 8], strides = [1, 1]} : vector<8x64xbf16> to vector<8x8xbf16>
      %c1_62 = arith.constant 1 : index
      %c0_63 = arith.constant 0 : index
      %c0_64 = arith.constant 0 : index
      %106 = vector.load %arg17[%c1_62, %c0_63, %c0_64] : memref<4x8x8xbf16, #tpu.memory_space<vmem>>, vector<1x8x8xbf16>
      %107 = vector.shape_cast %106 : vector<1x8x8xbf16> to vector<8x8xbf16>
      %108 = vector.shape_cast %105 : vector<8x8xbf16> to vector<1x8x8xbf16>
      tpu.vector_store %arg17[%c1_62, %c0_63, %c0_64], %108 {strides = array<i32>} : memref<4x8x8xbf16, #tpu.memory_space<vmem>>, vector<1x8x8xbf16>,
      %109 = vector.extract_strided_slice %88 {offsets = [0, 40], sizes = [8, 8], strides = [1, 1]} : vector<8x64xbf16> to vector<8x8xbf16>
      %c1_65 = arith.constant 1 : index
      %c0_66 = arith.constant 0 : index
      %c0_67 = arith.constant 0 : index
      %110 = vector.load %arg18[%c1_65, %c0_66, %c0_67] : memref<4x8x8xbf16, #tpu.memory_space<vmem>>, vector<1x8x8xbf16>
      %111 = vector.shape_cast %110 : vector<1x8x8xbf16> to vector<8x8xbf16>
      %112 = vector.shape_cast %109 : vector<8x8xbf16> to vector<1x8x8xbf16>
      tpu.vector_store %arg18[%c1_65, %c0_66, %c0_67], %112 {strides = array<i32>} : memref<4x8x8xbf16, #tpu.memory_space<vmem>>, vector<1x8x8xbf16>,
      %113 = vector.extract_strided_slice %86 {offsets = [0, 16], sizes = [8, 8], strides = [1, 1]} : vector<8x32xbf16> to vector<8x8xbf16>
      %c2 = arith.constant 2 : index
      %c0_68 = arith.constant 0 : index
      %c0_69 = arith.constant 0 : index
      %114 = vector.load %arg16[%c2, %c0_68, %c0_69] : memref<4x8x8xbf16, #tpu.memory_space<vmem>>, vector<1x8x8xbf16>
      %115 = vector.shape_cast %114 : vector<1x8x8xbf16> to vector<8x8xbf16>
      %116 = vector.shape_cast %113 : vector<8x8xbf16> to vector<1x8x8xbf16>
      tpu.vector_store %arg16[%c2, %c0_68, %c0_69], %116 {strides = array<i32>} : memref<4x8x8xbf16, #tpu.memory_space<vmem>>, vector<1x8x8xbf16>,
      %117 = vector.extract_strided_slice %88 {offsets = [0, 16], sizes = [8, 8], strides = [1, 1]} : vector<8x64xbf16> to vector<8x8xbf16>
      %c2_70 = arith.constant 2 : index
      %c0_71 = arith.constant 0 : index
      %c0_72 = arith.constant 0 : index
      %118 = vector.load %arg17[%c2_70, %c0_71, %c0_72] : memref<4x8x8xbf16, #tpu.memory_space<vmem>>, vector<1x8x8xbf16>
      %119 = vector.shape_cast %118 : vector<1x8x8xbf16> to vector<8x8xbf16>
      %120 = vector.shape_cast %117 : vector<8x8xbf16> to vector<1x8x8xbf16>
      tpu.vector_store %arg17[%c2_70, %c0_71, %c0_72], %120 {strides = array<i32>} : memref<4x8x8xbf16, #tpu.memory_space<vmem>>, vector<1x8x8xbf16>,
      %121 = vector.extract_strided_slice %88 {offsets = [0, 48], sizes = [8, 8], strides = [1, 1]} : vector<8x64xbf16> to vector<8x8xbf16>
      %c2_73 = arith.constant 2 : index
      %c0_74 = arith.constant 0 : index
      %c0_75 = arith.constant 0 : index
      %122 = vector.load %arg18[%c2_73, %c0_74, %c0_75] : memref<4x8x8xbf16, #tpu.memory_space<vmem>>, vector<1x8x8xbf16>
      %123 = vector.shape_cast %122 : vector<1x8x8xbf16> to vector<8x8xbf16>
      %124 = vector.shape_cast %121 : vector<8x8xbf16> to vector<1x8x8xbf16>
      tpu.vector_store %arg18[%c2_73, %c0_74, %c0_75], %124 {strides = array<i32>} : memref<4x8x8xbf16, #tpu.memory_space<vmem>>, vector<1x8x8xbf16>,
      %125 = vector.extract_strided_slice %86 {offsets = [0, 24], sizes = [8, 8], strides = [1, 1]} : vector<8x32xbf16> to vector<8x8xbf16>
      %c3 = arith.constant 3 : index
      %c0_76 = arith.constant 0 : index
      %c0_77 = arith.constant 0 : index
      %126 = vector.load %arg16[%c3, %c0_76, %c0_77] : memref<4x8x8xbf16, #tpu.memory_space<vmem>>, vector<1x8x8xbf16>
      %127 = vector.shape_cast %126 : vector<1x8x8xbf16> to vector<8x8xbf16>
      %128 = vector.shape_cast %125 : vector<8x8xbf16> to vector<1x8x8xbf16>
      tpu.vector_store %arg16[%c3, %c0_76, %c0_77], %128 {strides = array<i32>} : memref<4x8x8xbf16, #tpu.memory_space<vmem>>, vector<1x8x8xbf16>,
      %129 = vector.extract_strided_slice %88 {offsets = [0, 24], sizes = [8, 8], strides = [1, 1]} : vector<8x64xbf16> to vector<8x8xbf16>
      %c3_78 = arith.constant 3 : index
      %c0_79 = arith.constant 0 : index
      %c0_80 = arith.constant 0 : index
      %130 = vector.load %arg17[%c3_78, %c0_79, %c0_80] : memref<4x8x8xbf16, #tpu.memory_space<vmem>>, vector<1x8x8xbf16>
      %131 = vector.shape_cast %130 : vector<1x8x8xbf16> to vector<8x8xbf16>
      %132 = vector.shape_cast %129 : vector<8x8xbf16> to vector<1x8x8xbf16>
      tpu.vector_store %arg17[%c3_78, %c0_79, %c0_80], %132 {strides = array<i32>} : memref<4x8x8xbf16, #tpu.memory_space<vmem>>, vector<1x8x8xbf16>,
      %133 = vector.extract_strided_slice %88 {offsets = [0, 56], sizes = [8, 8], strides = [1, 1]} : vector<8x64xbf16> to vector<8x8xbf16>
      %c3_81 = arith.constant 3 : index
      %c0_82 = arith.constant 0 : index
      %c0_83 = arith.constant 0 : index
      %134 = vector.load %arg18[%c3_81, %c0_82, %c0_83] : memref<4x8x8xbf16, #tpu.memory_space<vmem>>, vector<1x8x8xbf16>
      %135 = vector.shape_cast %134 : vector<1x8x8xbf16> to vector<8x8xbf16>
      %136 = vector.shape_cast %133 : vector<8x8xbf16> to vector<1x8x8xbf16>
      tpu.vector_store %arg18[%c3_81, %c0_82, %c0_83], %136 {strides = array<i32>} : memref<4x8x8xbf16, #tpu.memory_space<vmem>>, vector<1x8x8xbf16>,
    } else {
    }
    %c0_i32_2 = arith.constant 0 : i32
    %5 = arith.cmpi eq, %arg2, %c0_i32_2 : i32
    %6 = arith.extui %5 : i1 to i32
    %c0_i32_3 = arith.constant 0 : i32
    %7 = arith.cmpi ne, %6, %c0_i32_3 : i32
    scf.if %7 {
      %cst_33 = arith.constant 0xFF800000 : f32
      %45 = vector.broadcast %cst_33 : f32 to vector<4x8x1xf32>
      %c0_34 = arith.constant 0 : index
      %c0_35 = arith.constant 0 : index
      %c0_36 = arith.constant 0 : index
      %46 = vector.load %arg19[%c0_34, %c0_35, %c0_36] : memref<4x8x1xf32, #tpu.memory_space<vmem>>, vector<4x8x1xf32>
      tpu.vector_store %arg19[%c0_34, %c0_35, %c0_36], %45 {strides = array<i32>} : memref<4x8x1xf32, #tpu.memory_space<vmem>>, vector<4x8x1xf32>,
      %cst_37 = arith.constant 0.000000e+00 : f32
      %47 = vector.broadcast %cst_37 : f32 to vector<4x8x1xf32>
      %c0_38 = arith.constant 0 : index
      %c0_39 = arith.constant 0 : index
      %c0_40 = arith.constant 0 : index
      %48 = vector.load %arg20[%c0_38, %c0_39, %c0_40] : memref<4x8x1xf32, #tpu.memory_space<vmem>>, vector<4x8x1xf32>
      tpu.vector_store %arg20[%c0_38, %c0_39, %c0_40], %47 {strides = array<i32>} : memref<4x8x1xf32, #tpu.memory_space<vmem>>, vector<4x8x1xf32>,
      %cst_41 = arith.constant 0.000000e+00 : f32
      %49 = vector.broadcast %cst_41 : f32 to vector<4x8x8xf32>
      %c0_42 = arith.constant 0 : index
      %c0_43 = arith.constant 0 : index
      %c0_44 = arith.constant 0 : index
      %50 = vector.load %arg21[%c0_42, %c0_43, %c0_44] : memref<4x8x8xf32, #tpu.memory_space<vmem>>, vector<4x8x8xf32>
      tpu.vector_store %arg21[%c0_42, %c0_43, %c0_44], %49 {strides = array<i32>} : memref<4x8x8xf32, #tpu.memory_space<vmem>>, vector<4x8x8xf32>,
    } else {
    }
    %c8_i32 = arith.constant 8 : i32
    %8 = arith.muli %arg1, %c8_i32 : i32
    %9 = tpu.assume_multiple %8, 8 : i32
    %c8_i32_4 = arith.constant 8 : i32
    %10 = arith.muli %arg2, %c8_i32_4 : i32
    %11 = tpu.assume_multiple %10, 8 : i32
    %c0 = arith.constant 0 : index
    %12 = arith.index_cast %9 : i32 to index
    %c0_5 = arith.constant 0 : index
    %13 = vector.load %arg16[%c0, %12, %c0_5] : memref<4x8x8xbf16, #tpu.memory_space<vmem>>, vector<4x8x8xbf16>
    %c0_6 = arith.constant 0 : index
    %14 = arith.index_cast %11 : i32 to index
    %c0_7 = arith.constant 0 : index
    %15 = vector.load %arg17[%c0_6, %14, %c0_7] : memref<4x8x8xbf16, #tpu.memory_space<vmem>>, vector<4x8x8xbf16>
    %c0_8 = arith.constant 0 : index
    %16 = arith.index_cast %11 : i32 to index
    %c0_9 = arith.constant 0 : index
    %17 = vector.load %arg18[%c0_8, %16, %c0_9] : memref<4x8x8xbf16, #tpu.memory_space<vmem>>, vector<4x8x8xbf16>
    "tpu.trace_start"() <{level = 10 : i32, message = "hqd,hkd->hqk"}> : () -> ()
    %cst = arith.constant dense<0.000000e+00> : vector<4x8x8xf32>
    %18 = tpu.matmul %13, %15, %cst {dimension_numbers = #tpu.dot_dimension_numbers<[2], [2], [1], [1], [0, 0, 0, 1, 1, 1], [0], [0]>} : vector<4x8x8xbf16>, vector<4x8x8xbf16>, vector<4x8x8xf32> -> vector<4x8x8xf32>
    "tpu.trace_stop"() : () -> ()
    %c0_10 = arith.constant 0 : index
    %c0_11 = arith.constant 0 : index
    %c0_12 = arith.constant 0 : index
    %19 = vector.load %arg19[%c0_10, %c0_11, %c0_12] : memref<4x8x1xf32, #tpu.memory_space<vmem>>, vector<4x8x1xf32>
    %cst_13 = arith.constant dense<0xFF800000> : vector<4x8xf32>
    %20 = vector.multi_reduction <maximumf>, %18, %cst_13 [2] : vector<4x8x8xf32> to vector<4x8xf32>
    %21 = vector.shape_cast %20 : vector<4x8xf32> to vector<4x8x1xf32>
    %22 = arith.maximumf %19, %21 : vector<4x8x1xf32>
    %23 = arith.subf %19, %22 : vector<4x8x1xf32>
    %24 = math.exp %23 : vector<4x8x1xf32>
    %25 = vector.broadcast %22 : vector<4x8x1xf32> to vector<4x8x8xf32>
    %26 = arith.subf %18, %25 : vector<4x8x8xf32>
    %27 = math.exp %26 : vector<4x8x8xf32>
    %c0_14 = arith.constant 0 : index
    %c0_15 = arith.constant 0 : index
    %c0_16 = arith.constant 0 : index
    %28 = vector.load %arg20[%c0_14, %c0_15, %c0_16] : memref<4x8x1xf32, #tpu.memory_space<vmem>>, vector<4x8x1xf32>
    %29 = arith.mulf %24, %28 : vector<4x8x1xf32>
    %cst_17 = arith.constant dense<0.000000e+00> : vector<4x8xf32>
    %30 = vector.multi_reduction <add>, %27, %cst_17 [2] : vector<4x8x8xf32> to vector<4x8xf32>
    %31 = vector.shape_cast %30 : vector<4x8xf32> to vector<4x8x1xf32>
    %32 = arith.addf %29, %31 : vector<4x8x1xf32>
    %c0_18 = arith.constant 0 : index
    %c0_19 = arith.constant 0 : index
    %c0_20 = arith.constant 0 : index
    %33 = vector.load %arg20[%c0_18, %c0_19, %c0_20] : memref<4x8x1xf32, #tpu.memory_space<vmem>>, vector<4x8x1xf32>
    tpu.vector_store %arg20[%c0_18, %c0_19, %c0_20], %32 {strides = array<i32>} : memref<4x8x1xf32, #tpu.memory_space<vmem>>, vector<4x8x1xf32>,
    %c0_21 = arith.constant 0 : index
    %c0_22 = arith.constant 0 : index
    %c0_23 = arith.constant 0 : index
    %34 = vector.load %arg21[%c0_21, %c0_22, %c0_23] : memref<4x8x8xf32, #tpu.memory_space<vmem>>, vector<4x8x8xf32>
    %35 = vector.broadcast %24 : vector<4x8x1xf32> to vector<4x8x8xf32>
    %36 = arith.mulf %35, %34 : vector<4x8x8xf32>
    %37 = arith.truncf %27 : vector<4x8x8xf32> to vector<4x8x8xbf16>
    "tpu.trace_start"() <{level = 10 : i32, message = "hqk,hkd->hqd"}> : () -> ()
    %cst_24 = arith.constant dense<0.000000e+00> : vector<4x8x8xf32>
    %38 = tpu.matmul %37, %17, %cst_24 {dimension_numbers = #tpu.dot_dimension_numbers<[2], [1], [1], [2], [0, 0, 0, 1, 1, 2], [0], [0]>} : vector<4x8x8xbf16>, vector<4x8x8xbf16>, vector<4x8x8xf32> -> vector<4x8x8xf32>
    "tpu.trace_stop"() : () -> ()
    %39 = arith.addf %36, %38 : vector<4x8x8xf32>
    %c0_25 = arith.constant 0 : index
    %c0_26 = arith.constant 0 : index
    %c0_27 = arith.constant 0 : index
    %40 = vector.load %arg21[%c0_25, %c0_26, %c0_27] : memref<4x8x8xf32, #tpu.memory_space<vmem>>, vector<4x8x8xf32>
    tpu.vector_store %arg21[%c0_25, %c0_26, %c0_27], %39 {strides = array<i32>} : memref<4x8x8xf32, #tpu.memory_space<vmem>>, vector<4x8x8xf32>,
    %c0_28 = arith.constant 0 : index
    %c0_29 = arith.constant 0 : index
    %c0_30 = arith.constant 0 : index
    %41 = vector.load %arg19[%c0_28, %c0_29, %c0_30] : memref<4x8x1xf32, #tpu.memory_space<vmem>>, vector<4x8x1xf32>
    tpu.vector_store %arg19[%c0_28, %c0_29, %c0_30], %22 {strides = array<i32>} : memref<4x8x1xf32, #tpu.memory_space<vmem>>, vector<4x8x1xf32>,
    %c0_i32_31 = arith.constant 0 : i32
    %42 = arith.cmpi eq, %arg2, %c0_i32_31 : i32
    %43 = arith.extui %42 : i1 to i32
    %c0_i32_32 = arith.constant 0 : i32
    %44 = arith.cmpi ne, %43, %c0_i32_32 : i32
    scf.if %44 {
      %c0_33 = arith.constant 0 : index
      %c0_34 = arith.constant 0 : index
      %c0_35 = arith.constant 0 : index
      %45 = vector.load %arg21[%c0_33, %c0_34, %c0_35] : memref<4x8x8xf32, #tpu.memory_space<vmem>>, vector<4x8x8xf32>
      %c0_36 = arith.constant 0 : index
      %c0_37 = arith.constant 0 : index
      %c0_38 = arith.constant 0 : index
      %46 = vector.load %arg20[%c0_36, %c0_37, %c0_38] : memref<4x8x1xf32, #tpu.memory_space<vmem>>, vector<4x8x1xf32>
      %47 = tpu.reciprocal %46 {approx = true} : vector<4x8x1xf32> -> vector<4x8x1xf32>
      %48 = vector.broadcast %47 : vector<4x8x1xf32> to vector<4x8x8xf32>
      %49 = arith.mulf %45, %48 : vector<4x8x8xf32>
      %50 = arith.truncf %49 : vector<4x8x8xf32> to vector<4x8x8xbf16>
      %c0_39 = arith.constant 0 : index
      %c0_40 = arith.constant 0 : index
      %c0_41 = arith.constant 0 : index
      %51 = vector.load %arg9[%c0_39, %c0_40, %c0_41] : memref<4x8x32xbf16, #tpu.memory_space<vmem>>, vector<4x8x32xbf16>
      "tpu.trace_start"() <{level = 10 : i32, message = "hqd,hde->hqe"}> : () -> ()
      %cst_42 = arith.constant dense<0.000000e+00> : vector<4x8x32xf32>
      %52 = tpu.matmul %50, %51, %cst_42 {dimension_numbers = #tpu.dot_dimension_numbers<[2], [1], [1], [2], [0, 0, 0, 1, 1, 2], [0], [0]>} : vector<4x8x8xbf16>, vector<4x8x32xbf16>, vector<4x8x32xf32> -> vector<4x8x32xf32>
      "tpu.trace_stop"() : () -> ()
      %cst_43 = arith.constant dense<0.000000e+00> : vector<8x32xf32>
      %53 = vector.multi_reduction <add>, %52, %cst_43 [0] : vector<4x8x32xf32> to vector<8x32xf32>
      %c0_44 = arith.constant 0 : index
      %c0_45 = arith.constant 0 : index
      %54 = vector.load %arg10[%c0_44, %c0_45] : memref<1x32xf32, #tpu.memory_space<vmem>>, vector<1x32xf32>
      %55 = vector.shape_cast %54 : vector<1x32xf32> to vector<32xf32>
      %56 = vector.shape_cast %55 : vector<32xf32> to vector<1x32xf32>
      %57 = vector.broadcast %56 : vector<1x32xf32> to vector<8x32xf32>
      %58 = arith.addf %53, %57 : vector<8x32xf32>
      %c0_46 = arith.constant 0 : index
      %c0_47 = arith.constant 0 : index
      %c0_48 = arith.constant 0 : index
      %59 = vector.load %arg4[%c0_46, %c0_47, %c0_48] : memref<1x8x32xf32, #tpu.memory_space<vmem>>, vector<1x8x32xf32>
      %60 = vector.shape_cast %59 : vector<1x8x32xf32> to vector<8x32xf32>
      %61 = arith.addf %58, %60 : vector<8x32xf32>
      %c0_49 = arith.constant 0 : index
      %c0_50 = arith.constant 0 : index
      %62 = vector.load %arg11[%c0_49, %c0_50] : memref<1x32xf32, #tpu.memory_space<vmem>>, vector<1x32xf32>
      %63 = vector.shape_cast %62 : vector<1x32xf32> to vector<32xf32>
      %c0_51 = arith.constant 0 : index
      %c0_52 = arith.constant 0 : index
      %64 = vector.load %arg12[%c0_51, %c0_52] : memref<1x32xf32, #tpu.memory_space<vmem>>, vector<1x32xf32>
      %65 = vector.shape_cast %64 : vector<1x32xf32> to vector<32xf32>
      %cst_53 = arith.constant dense<0.000000e+00> : vector<8xf32>
      %66 = vector.multi_reduction <add>, %61, %cst_53 [1] : vector<8x32xf32> to vector<8xf32>
      %67 = vector.shape_cast %66 : vector<8xf32> to vector<8x1xf32>
      %cst_54 = arith.constant 3.200000e+01 : f32
      %68 = vector.broadcast %cst_54 : f32 to vector<8x1xf32>
      %69 = arith.divf %67, %68 : vector<8x1xf32>
      %70 = vector.broadcast %69 : vector<8x1xf32> to vector<8x32xf32>
      %71 = arith.subf %61, %70 : vector<8x32xf32>
      %72 = arith.mulf %71, %71 : vector<8x32xf32>
      %cst_55 = arith.constant dense<0.000000e+00> : vector<8xf32>
      %73 = vector.multi_reduction <add>, %72, %cst_55 [1] : vector<8x32xf32> to vector<8xf32>
      %74 = vector.shape_cast %73 : vector<8xf32> to vector<8x1xf32>
      %cst_56 = arith.constant 3.200000e+01 : f32
      %75 = vector.broadcast %cst_56 : f32 to vector<8x1xf32>
      %76 = arith.divf %74, %75 : vector<8x1xf32>
      %77 = vector.broadcast %69 : vector<8x1xf32> to vector<8x32xf32>
      %78 = arith.subf %61, %77 : vector<8x32xf32>
      %cst_57 = arith.constant 9.99999997E-7 : f32
      %79 = vector.broadcast %cst_57 : f32 to vector<8x1xf32>
      %80 = arith.addf %76, %79 : vector<8x1xf32>
      %81 = math.rsqrt %80 : vector<8x1xf32>
      %82 = vector.broadcast %81 : vector<8x1xf32> to vector<8x32xf32>
      %83 = arith.mulf %78, %82 : vector<8x32xf32>
      %84 = vector.shape_cast %63 : vector<32xf32> to vector<1x32xf32>
      %85 = vector.broadcast %84 : vector<1x32xf32> to vector<8x32xf32>
      %86 = arith.mulf %83, %85 : vector<8x32xf32>
      %87 = vector.shape_cast %65 : vector<32xf32> to vector<1x32xf32>
      %88 = vector.broadcast %87 : vector<1x32xf32> to vector<8x32xf32>
      %89 = arith.addf %86, %88 : vector<8x32xf32>
      %90 = arith.truncf %89 : vector<8x32xf32> to vector<8x32xbf16>
      %c0_58 = arith.constant 0 : index
      %c0_59 = arith.constant 0 : index
      %91 = vector.load %arg13[%c0_58, %c0_59] : memref<32x32xbf16, #tpu.memory_space<vmem>>, vector<32x32xbf16>
      %cst_60 = arith.constant dense<0.000000e+00> : vector<8x32xf32>
      %92 = tpu.matmul %90, %91, %cst_60 {dimension_numbers = #tpu.dot_dimension_numbers<[1], [0], [0], [1], [0, 0, 1, 1], [], []>} : vector<8x32xbf16>, vector<32x32xbf16>, vector<8x32xf32> -> vector<8x32xf32>
      %c0_61 = arith.constant 0 : index
      %c0_62 = arith.constant 0 : index
      %93 = vector.load %arg14[%c0_61, %c0_62] : memref<1x32xf32, #tpu.memory_space<vmem>>, vector<1x32xf32>
      %94 = vector.shape_cast %93 : vector<1x32xf32> to vector<32xf32>
      %95 = vector.shape_cast %94 : vector<32xf32> to vector<1x32xf32>
      %96 = vector.broadcast %95 : vector<1x32xf32> to vector<8x32xf32>
      %97 = arith.addf %92, %96 : vector<8x32xf32>
      %98 = arith.addf %61, %97 : vector<8x32xf32>
      %c0_63 = arith.constant 0 : index
      %c0_64 = arith.constant 0 : index
      %c0_65 = arith.constant 0 : index
      %99 = vector.load %arg15[%c0_63, %c0_64, %c0_65] : memref<1x8x32xf32, #tpu.memory_space<vmem>>, vector<1x8x32xf32>
      %100 = vector.shape_cast %99 : vector<1x8x32xf32> to vector<8x32xf32>
      %101 = vector.shape_cast %98 : vector<8x32xf32> to vector<1x8x32xf32>
      tpu.vector_store %arg15[%c0_63, %c0_64, %c0_65], %101 {strides = array<i32>} : memref<1x8x32xf32, #tpu.memory_space<vmem>>, vector<1x8x32xf32>,
    } else {
    }
    return
  }
  func.func @transform_0(%arg0: i32, %arg1: i32, %arg2: i32) -> (i32, i32, i32) {
    %c0_i32 = arith.constant 0 : i32
    %c0_i32_0 = arith.constant 0 : i32
    %c0_i32_1 = arith.constant 0 : i32
    return %arg0, %c0_i32, %c0_i32_0 : i32, i32, i32
  }
  func.func @transform_1(%arg0: i32, %arg1: i32, %arg2: i32) -> (i32, i32, i32) {
    %c0_i32 = arith.constant 0 : i32
    %c0_i32_0 = arith.constant 0 : i32
    return %arg0, %arg1, %c0_i32 : i32, i32, i32
  }
  func.func @transform_2(%arg0: i32, %arg1: i32, %arg2: i32) -> (i32, i32) {
    %c0_i32 = arith.constant 0 : i32
    %c0_i32_0 = arith.constant 0 : i32
    %c0_i32_1 = arith.constant 0 : i32
    return %c0_i32, %c0_i32_0 : i32, i32
  }
  func.func @transform_3(%arg0: i32, %arg1: i32, %arg2: i32) -> (i32, i32) {
    %c0_i32 = arith.constant 0 : i32
    %c0_i32_0 = arith.constant 0 : i32
    %c0_i32_1 = arith.constant 0 : i32
    return %c0_i32, %c0_i32_0 : i32, i32
  }
  func.func @transform_4(%arg0: i32, %arg1: i32, %arg2: i32) -> (i32, i32) {
    %c0_i32 = arith.constant 0 : i32
    %c0_i32_0 = arith.constant 0 : i32
    %c0_i32_1 = arith.constant 0 : i32
    return %c0_i32, %c0_i32_0 : i32, i32
  }
  func.func @transform_5(%arg0: i32, %arg1: i32, %arg2: i32) -> (i32, i32) {
    %c0_i32 = arith.constant 0 : i32
    %c0_i32_0 = arith.constant 0 : i32
    %c0_i32_1 = arith.constant 0 : i32
    return %c0_i32, %c0_i32_0 : i32, i32
  }
  func.func @transform_6(%arg0: i32, %arg1: i32, %arg2: i32) -> (i32, i32, i32) {
    %c0_i32 = arith.constant 0 : i32
    %c0_i32_0 = arith.constant 0 : i32
    %c0_i32_1 = arith.constant 0 : i32
    %c0_i32_2 = arith.constant 0 : i32
    return %c0_i32, %c0_i32_0, %c0_i32_1 : i32, i32, i32
  }
  func.func @transform_7(%arg0: i32, %arg1: i32, %arg2: i32) -> (i32, i32) {
    %c0_i32 = arith.constant 0 : i32
    %c0_i32_0 = arith.constant 0 : i32
    %c0_i32_1 = arith.constant 0 : i32
    return %c0_i32, %c0_i32_0 : i32, i32
  }
  func.func @transform_8(%arg0: i32, %arg1: i32, %arg2: i32) -> (i32, i32) {
    %c0_i32 = arith.constant 0 : i32
    %c0_i32_0 = arith.constant 0 : i32
    %c0_i32_1 = arith.constant 0 : i32
    return %c0_i32, %c0_i32_0 : i32, i32
  }
  func.func @transform_9(%arg0: i32, %arg1: i32, %arg2: i32) -> (i32, i32) {
    %c0_i32 = arith.constant 0 : i32
    %c0_i32_0 = arith.constant 0 : i32
    %c0_i32_1 = arith.constant 0 : i32
    return %c0_i32, %c0_i32_0 : i32, i32
  }
  func.func @transform_10(%arg0: i32, %arg1: i32, %arg2: i32) -> (i32, i32) {
    %c0_i32 = arith.constant 0 : i32
    %c0_i32_0 = arith.constant 0 : i32
    %c0_i32_1 = arith.constant 0 : i32
    return %c0_i32, %c0_i32_0 : i32, i32
  }
  func.func @transform_11(%arg0: i32, %arg1: i32, %arg2: i32) -> (i32, i32) {
    %c0_i32 = arith.constant 0 : i32
    %c0_i32_0 = arith.constant 0 : i32
    %c0_i32_1 = arith.constant 0 : i32
    return %c0_i32, %c0_i32_0 : i32, i32
  }
  func.func @transform_12(%arg0: i32, %arg1: i32, %arg2: i32) -> (i32, i32, i32) {
    %c0_i32 = arith.constant 0 : i32
    %c0_i32_0 = arith.constant 0 : i32
    return %arg0, %arg1, %c0_i32 : i32, i32, i32
  }
}

</mosaic_0001>

<bundles_post_ra>
// kernel: tpu_custom_call.1
= control target key start
LH: loop header
LB: loop body
LE: loop exit
PB: predicated region body
PF: predicated region fallthrough
CT: control target
= control target key end

     0   :  { %s3527_s0 = inlined_call_operand.hbm [shape: f32[2,8,32], index: 0, kind: input, shape index: {}]   ;;  %s3528_s1 = inlined_call_operand.hbm [shape: f32[2,8,32], index: 1, kind: input, shape index: {}]   ;;  %s3529_s2 = inlined_call_operand.hbm [shape: f32[1,32], index: 2, kind: input, shape index: {}]   ;;  %s3530_s3 = inlined_call_operand.hbm [shape: f32[1,32], index: 3, kind: input, shape index: {}]   ;;  %s3531_s4 = inlined_call_operand.hbm [shape: bf16[32,96], index: 4, kind: input, shape index: {}]   ;;  %s3532_s5 = inlined_call_operand.hbm [shape: f32[1,96], index: 5, kind: input, shape index: {}]   ;;  %s3533_s6 = inlined_call_operand.hbm [shape: bf16[4,8,32], index: 6, kind: input, shape index: {}]   ;;  %s3534_s7 = inlined_call_operand.hbm [shape: f32[1,32], index: 7, kind: input, shape index: {}]   ;;  %s3535_s8 = inlined_call_operand.hbm [shape: f32[1,32], index: 8, kind: input, shape index: {}]   ;;  %s3536_s9 = inlined_call_operand.hbm [shape: f32[1,32], index: 9, kind: input, shape index: {}]   ;;  %s3537_s10 = inlined_call_operand.hbm [shape: bf16[32,32], index: 10, kind: input, shape index: {}]   ;;  %s3538_s11 = inlined_call_operand.hbm [shape: f32[1,32], index: 11, kind: input, shape index: {}]   ;;  %s3539_s12 = inlined_call_operand.hbm [shape: f32[2,8,32], index: 12, kind: output, shape index: {}]  }
   0x1   :  { %3547 = sst [smem:[#allocation40_spill]] %s3528_s1 }
   0x2   :  { %3548 = sst [smem:[#allocation41_spill]] %s3529_s2 }
   0x3   :  { %3549 = sst [smem:[#allocation42_spill]] %s3530_s3 }
   0x4   :  { %3550 = sst [smem:[#allocation43_spill]] %s3531_s4 }
   0x5   :  { %3551 = sst [smem:[#allocation44_spill]] %s3532_s5 }
   0x6   :  { %3552 = sst [smem:[#allocation45_spill]] %s3533_s6 }
   0x7   :  { %3553 = sst [smem:[#allocation46_spill]] %s3534_s7 }
   0x8   :  { %3554 = sst [smem:[#allocation47_spill]] %s3535_s8 }
   0x9   :  { %3555 = sst [smem:[#allocation48_spill]] %s3536_s9 }
   0xa   :  { %3556 = sst [smem:[#allocation49_spill]] %s3539_s12 }
   0xb   :  { %17 = vsyncpa [#allocation9], 0 }
   0xc   :  { %19 = vsyncpa [#allocation9 + $0x1], 0 }
   0xd   :  { %20 = vsyncpa [#allocation12], 0 }
   0xe   :  { %22 = vsyncpa [#allocation12 + $0x1], 0 }
   0xf   :  { %23 = vsyncpa [#allocation15], 0 }
  0x10   :  { %24 = vsyncpa [#allocation18], 0 }
  0x11   :  { %25 = vsyncpa [#allocation21], 0 }
  0x12   :  { %26 = vsyncpa [#allocation24], 0 }
  0x13   :  { %27 = vsyncpa [#allocation27], 0 }
  0x14   :  { %28 = vsyncpa [#allocation10], 0 }
  0x15   :  { %30 = vsyncpa [#allocation10 + $0x1], 0  ;;  %s2858_s21 = smov 0   ;;  %s2860_s22 = smov 0  }
  0x16   :  { %s2862_s23 = smov 0   ;;  %s2864_s24 = smov 0  }
  0x17   :  { %s2866_s25 = smov 0   ;;  %s2868_s26 = smov 0  }
  0x18 LB: > { %3557 = sst [smem:[#allocation38_spill]] %s2753_s24  ;;  %s2889_s27 = sadd.s32 4294967295, %s2761_s26   ;;  %s2761_s26 = sphi %s2868_s26, %s36_s26   ;;  %s2757_s25 = sphi %s2866_s25, %s3601_s25   ;;  %s2753_s24 = sphi %s2864_s24, %s3600_s24   ;;  %s2749_s23 = sphi %s2862_s23, %s3599_s23   ;;  %s2745_s22 = sphi %s2860_s22, %s3598_s22   ;;  %s2741_s21 = sphi %s2858_s21, %s3597_s21  }
  0x19   : > { %p1911_p0 = scmp.ge.s32.totalorder %s2761_s26, 1  ;;  %p3541_p1 = scmp.eq.s32.totalorder %s2889_s27, 0 }
  0x1a   : > { %p352_p2 = scmp.lt.s32.totalorder %s2761_s26, 3  ;;  %s2763_s29 = smov [#allocation13]  }
  0x1b   : > { %s365_s30 = sshll.u32 %s2763_s29, 4  ;;  %s2764_s13 = smov [#allocation14]   ;;  %s366_s30 = int_to_ptr.vmem [resolvable:$true] %s365_s30 }
  0x1c   : > { %p2894_p3 = pnand %p1911_p0, %p352_p2  ;;  %s376_s14 = sshll.u32 %s2764_s13, 4  ;;  %s2907_s14 = int_to_ptr.vmem [resolvable:$true] %s376_s14 }
  0x1d   : > { %s2765_s16 = smov [#allocation17]   ;;  %s3561_s2 = sld [smem:[#allocation41_spill]] }
  0x1e   : > { %s3558_s28 = scalar_select %p2894_p3, 1, 0 }
  0x1f   : > { %p2138_p5 = pneg %p2894_p3  ;;  %s400_s17 = sshll.u32 %s2765_s16, 4  ;;  %s2909_s17 = int_to_ptr.vmem [resolvable:$true] %s400_s17 }
  0x20   : > { %3559 = sst [smem:[#allocation39_spill]] %s3558_s28 }
  0x21   : > { %p2903_p6 = pnand %p2138_p5, %p3541_p1 }
  0x23   : > { %s2311_s20 = scalar_lea.hbm %s3561_s2, 16  ;;  %p2919_p8 = pneg %p2903_p6 }
  0x24   : > { %p2312_p7 = scmp.ne.s32.totalorder %s3561_s2, %s2311_s20  ;;  %p2318_p11 = scmp.lt.u32.totalorder %s2311_s20, %s3561_s2 }
  0x26   : > { %p2314_p9 = pnand %p2919_p8, %p2312_p7 }
  0x28   : > { %p2315_p10 = pneg %p2314_p9 }
  0x2a   : > { %p2320_p12 = pnand %p2318_p11, %p2315_p10 }
  0x2c   : > { %2323 = shalt.err (!%p2320_p12)
}
  0x2d   : > { %s2324_s18 = scalar_lea.vmem %s366_s30, 16  ;;  %s2331_s12 = scalar_lea.vmem %s366_s30, 32 }
  0x2e   : > { %p2325_p13 = scmp.ne.s32.totalorder %s366_s30, %s2324_s18  ;;  %p2332_p5 = scmp.lt.s32.totalorder %s366_s30, %s366_s30 }
  0x2f   : > { %p2333_p4 = scmp.lt.s32.totalorder %s2331_s12, %s2324_s18 }
  0x30   : > { %p2327_p0 = pnand %p2325_p13, %p2919_p8 }
  0x31   : > { %p2334_p1 = por %p2333_p4, %p2332_p5 }
  0x32   : > { %p2328_p2 = pneg %p2327_p0 }
  0x34   : > { %p2335_p3 = pnand %p2334_p1, %p2328_p2 }
  0x36   : > { %2338 = shalt.err (!%p2335_p3)
}
  0x37   : > { %2141 = dma.hbm_to_vmem [thread:$0]  (!%p2903_p6), %s3561_s2, 16, %s366_s30, [#allocation12]  }
  0x38   : > { %s3563_s3 = sld [smem:[#allocation42_spill]] }
  0x3e   : > { %s2339_s16 = scalar_lea.hbm %s3563_s3, 16 }
  0x3f   : > { %p2340_p7 = scmp.ne.s32.totalorder %s3563_s3, %s2339_s16  ;;  %p2346_p1 = scmp.lt.u32.totalorder %s2339_s16, %s3563_s3 }
  0x41   : > { %p2342_p9 = pnand %p2340_p7, %p2919_p8 }
  0x43   : > { %p2343_p4 = pneg %p2342_p9 }
  0x45   : > { %p2348_p3 = pnand %p2346_p1, %p2343_p4 }
  0x47   : > { %2351 = shalt.err (!%p2348_p3)
}
  0x48   : > { %s2352_s30 = scalar_lea.vmem %s2907_s14, 16  ;;  %s2359_s1 = scalar_lea.vmem %s2907_s14, 32 }
  0x49   : > { %p2353_p10 = scmp.ne.s32.totalorder %s2907_s14, %s2352_s30  ;;  %p2360_p13 = scmp.lt.s32.totalorder %s2907_s14, %s2907_s14 }
  0x4a   : > { %p2361_p0 = scmp.lt.s32.totalorder %s2359_s1, %s2352_s30 }
  0x4b   : > { %p2355_p11 = pnand %p2353_p10, %p2919_p8 }
  0x4c   : > { %p2362_p2 = por %p2361_p0, %p2360_p13 }
  0x4d   : > { %p2356_p12 = pneg %p2355_p11 }
  0x4f   : > { %p2363_p5 = pnand %p2362_p2, %p2356_p12 }
  0x51   : > { %2366 = shalt.err (!%p2363_p5)
}
  0x52   : > { %2144 = dma.hbm_to_vmem [thread:$0]  (!%p2903_p6), %s3563_s3, 16, %s2907_s14, [#allocation15]  }
  0x53   : > { %s3564_s5 = sld [smem:[#allocation44_spill]] }
  0x59   : > { %s2367_s20 = scalar_lea.hbm %s3564_s5, 16 }
  0x5a   : > { %p2368_p7 = scmp.ne.s32.totalorder %s3564_s5, %s2367_s20  ;;  %p2374_p1 = scmp.lt.u32.totalorder %s2367_s20, %s3564_s5 }
  0x5c   : > { %p2370_p9 = pnand %p2368_p7, %p2919_p8 }
  0x5e   : > { %p2371_p4 = pneg %p2370_p9 }
  0x60   : > { %p2376_p3 = pnand %p2374_p1, %p2371_p4 }
  0x62   : > { %2379 = shalt.err (!%p2376_p3)
}
  0x63   : > { %s2380_s14 = scalar_lea.vmem %s2909_s17, 16  ;;  %s2387_s1 = scalar_lea.vmem %s2909_s17, 32 }
  0x64   : > { %p2381_p10 = scmp.ne.s32.totalorder %s2909_s17, %s2380_s14  ;;  %p2388_p13 = scmp.lt.s32.totalorder %s2909_s17, %s2909_s17 }
  0x65   : > { %p2389_p0 = scmp.lt.s32.totalorder %s2387_s1, %s2380_s14 }
  0x66   : > { %p2383_p11 = pnand %p2381_p10, %p2919_p8 }
  0x67   : > { %p2390_p2 = por %p2389_p0, %p2388_p13 }
  0x68   : > { %p2384_p12 = pneg %p2383_p11 }
  0x6a   : > { %p2391_p5 = pnand %p2390_p2, %p2384_p12 }
  0x6c   : > { %2394 = shalt.err (!%p2391_p5)
}
  0x6d   : > { %2150 = dma.hbm_to_vmem [thread:$0]  (!%p2903_p6), %s3564_s5, 16, %s2909_s17, [#allocation18]  }
  0x6e   : > { %s2766_s29 = smov [#allocation20]   ;;  %s2767_s20 = smov [#allocation23]  }
  0x6f   : > { %s424_s24 = sshll.u32 %s2766_s29, 4  ;;  %s446_s16 = sshll.u32 %s2767_s20, 4  ;;  %s425_s24 = int_to_ptr.vmem [resolvable:$true] %s424_s24  ;;  %s447_s16 = int_to_ptr.vmem [resolvable:$true] %s446_s16 }
  0x70   : > { %s3565_s7 = sld [smem:[#allocation46_spill]] }
  0x76   : > { %s2395_s30 = scalar_lea.hbm %s3565_s7, 16 }
  0x77   : > { %p2396_p7 = scmp.ne.s32.totalorder %s3565_s7, %s2395_s30  ;;  %p2402_p1 = scmp.lt.u32.totalorder %s2395_s30, %s3565_s7 }
  0x79   : > { %p2398_p9 = pnand %p2396_p7, %p2919_p8 }
  0x7b   : > { %p2399_p4 = pneg %p2398_p9 }
  0x7d   : > { %p2404_p3 = pnand %p2402_p1, %p2399_p4 }
  0x7f   : > { %2407 = shalt.err (!%p2404_p3)
}
  0x80   : > { %s2408_s17 = scalar_lea.vmem %s425_s24, 16  ;;  %s2415_s19 = scalar_lea.vmem %s425_s24, 32 }
  0x81   : > { %p2409_p10 = scmp.ne.s32.totalorder %s425_s24, %s2408_s17  ;;  %p2416_p13 = scmp.lt.s32.totalorder %s425_s24, %s425_s24 }
  0x82   : > { %p2417_p0 = scmp.lt.s32.totalorder %s2415_s19, %s2408_s17 }
  0x83   : > { %p2411_p11 = pnand %p2409_p10, %p2919_p8 }
  0x84   : > { %p2418_p2 = por %p2417_p0, %p2416_p13 }
  0x85   : > { %p2412_p12 = pneg %p2411_p11 }
  0x87   : > { %p2419_p5 = pnand %p2418_p2, %p2412_p12 }
  0x89   : > { %2422 = shalt.err (!%p2419_p5)
}
  0x8a   : > { %2156 = dma.hbm_to_vmem [thread:$0]  (!%p2903_p6), %s3565_s7, 16, %s425_s24, [#allocation21]  }
  0x8b   : > { %s3566_s9 = sld [smem:[#allocation48_spill]] }
  0x91   : > { %s2423_s12 = scalar_lea.hbm %s3566_s9, 16 }
  0x92   : > { %p2424_p7 = scmp.ne.s32.totalorder %s3566_s9, %s2423_s12  ;;  %p2430_p1 = scmp.lt.u32.totalorder %s2423_s12, %s3566_s9 }
  0x94   : > { %p2426_p9 = pnand %p2424_p7, %p2919_p8 }
  0x96   : > { %p2427_p4 = pneg %p2426_p9 }
  0x98   : > { %p2432_p3 = pnand %p2430_p1, %p2427_p4 }
  0x9a   : > { %2435 = shalt.err (!%p2432_p3)
}
  0x9b   : > { %s2436_s17 = scalar_lea.vmem %s447_s16, 16  ;;  %s2443_s24 = scalar_lea.vmem %s447_s16, 32 }
  0x9c   : > { %p2437_p10 = scmp.ne.s32.totalorder %s447_s16, %s2436_s17  ;;  %p2444_p13 = scmp.lt.s32.totalorder %s447_s16, %s447_s16 }
  0x9d   : > { %p2445_p0 = scmp.lt.s32.totalorder %s2443_s24, %s2436_s17 }
  0x9e   : > { %p2439_p11 = pnand %p2437_p10, %p2919_p8 }
  0x9f   : > { %p2446_p2 = por %p2445_p0, %p2444_p13 }
  0xa0   : > { %p2440_p12 = pneg %p2439_p11 }
  0xa2   : > { %p2447_p5 = pnand %p2446_p2, %p2440_p12 }
  0xa4   : > { %2450 = shalt.err (!%p2447_p5)
}
  0xa5   : > { %2162 = dma.hbm_to_vmem [thread:$0]  (!%p2903_p6), %s3566_s9, 16, %s447_s16, [#allocation24]  }
  0xa6   : > { %s2768_s20 = smov [#allocation16]   ;;  %s3567_s4 = sld [smem:[#allocation43_spill]] }
  0xa7   : > { %s386_s2 = sshll.u32 %s2768_s20, 4  ;;  %s387_s2 = int_to_ptr.vmem [resolvable:$true] %s386_s2 }
  0xac   : > { %s2451_s30 = scalar_lea.hbm %s3567_s4, 256 }
  0xad   : > { %p2452_p7 = scmp.ne.s32.totalorder %s3567_s4, %s2451_s30  ;;  %p2458_p1 = scmp.lt.u32.totalorder %s2451_s30, %s3567_s4 }
  0xaf   : > { %p2454_p9 = pnand %p2452_p7, %p2919_p8 }
  0xb1   : > { %p2455_p4 = pneg %p2454_p9 }
  0xb3   : > { %p2460_p3 = pnand %p2458_p1, %p2455_p4 }
  0xb5   : > { %2463 = shalt.err (!%p2460_p3)
}
  0xb6   : > { %s2464_s16 = scalar_lea.vmem %s387_s2, 256  ;;  %p2472_p13 = scmp.lt.s32.totalorder %s387_s2, %s387_s2 }
  0xb7   : > { %p2465_p10 = scmp.ne.s32.totalorder %s387_s2, %s2464_s16  ;;  %p2473_p0 = scmp.lt.s32.totalorder %s2464_s16, %s2464_s16 }
  0xb9   : > { %p2467_p11 = pnand %p2465_p10, %p2919_p8  ;;  %p2474_p2 = por %p2473_p0, %p2472_p13 }
  0xbb   : > { %p2468_p12 = pneg %p2467_p11 }
  0xbd   : > { %p2475_p5 = pnand %p2474_p2, %p2468_p12 }
  0xbf   : > { %2478 = shalt.err (!%p2475_p5)
}
  0xc0   : > { %s2769_s24 = smov 64   ;;  %s2770_s19 = smov 4  }
  0xc1   : > { %2147 = dma.hbm_to_vmem [thread:$0]  (!%p2903_p6), %s3567_s4, 256, %s387_s2, [#allocation15], %s2769_s24, %s2769_s24, %s2770_s19  }
  0xc2   : > { %s2771_s18 = smov [#allocation19]   ;;  %s2772_s30 = smov [#allocation22]  }
  0xc3   : > { %s410_s12 = sshll.u32 %s2771_s18, 4  ;;  %s435_s14 = sshll.u32 %s2772_s30, 4  ;;  %s411_s12 = int_to_ptr.vmem [resolvable:$true] %s410_s12  ;;  %s3040_s14 = int_to_ptr.vmem [resolvable:$true] %s435_s14 }
  0xc4   : > { %s3568_s6 = sld [smem:[#allocation45_spill]] }
  0xca   : > { %s2479_s17 = scalar_lea.hbm %s3568_s6, 256 }
  0xcb   : > { %p2480_p7 = scmp.ne.s32.totalorder %s3568_s6, %s2479_s17  ;;  %p2486_p1 = scmp.lt.u32.totalorder %s2479_s17, %s3568_s6 }
  0xcd   : > { %p2482_p9 = pnand %p2480_p7, %p2919_p8 }
  0xcf   : > { %p2483_p4 = pneg %p2482_p9 }
  0xd1   : > { %p2488_p3 = pnand %p2486_p1, %p2483_p4 }
  0xd3   : > { %2491 = shalt.err (!%p2488_p3)
}
  0xd4   : > { %s2492_s20 = scalar_lea.vmem %s411_s12, 256  ;;  %p2500_p13 = scmp.lt.s32.totalorder %s411_s12, %s411_s12 }
  0xd5   : > { %p2493_p10 = scmp.ne.s32.totalorder %s411_s12, %s2492_s20  ;;  %p2501_p0 = scmp.lt.s32.totalorder %s2492_s20, %s2492_s20 }
  0xd7   : > { %p2495_p11 = pnand %p2493_p10, %p2919_p8  ;;  %p2502_p2 = por %p2501_p0, %p2500_p13 }
  0xd9   : > { %p2496_p12 = pneg %p2495_p11 }
  0xdb   : > { %p2503_p5 = pnand %p2502_p2, %p2496_p12 }
  0xdd   : > { %2506 = shalt.err (!%p2503_p5)
}
  0xde   : > { %2153 = dma.hbm_to_vmem [thread:$0]  (!%p2903_p6), %s3568_s6, 256, %s411_s12, [#allocation18], %s2769_s24, %s2769_s24, %s2770_s19  }
  0xdf   : > { %s3569_s8 = sld [smem:[#allocation47_spill]] }
  0xe5   : > { %s2507_s28 = scalar_lea.hbm %s3569_s8, 16 }
  0xe6   : > { %p2508_p7 = scmp.ne.s32.totalorder %s3569_s8, %s2507_s28  ;;  %p2514_p1 = scmp.lt.u32.totalorder %s2507_s28, %s3569_s8 }
  0xe8   : > { %p2510_p9 = pnand %p2508_p7, %p2919_p8 }
  0xea   : > { %p2511_p4 = pneg %p2510_p9 }
  0xec   : > { %p2516_p3 = pnand %p2514_p1, %p2511_p4 }
  0xee   : > { %2519 = shalt.err (!%p2516_p3)
}
  0xef   : > { %s2520_s12 = scalar_lea.vmem %s3040_s14, 16  ;;  %s2527_s20 = scalar_lea.vmem %s3040_s14, 32 }
  0xf0   : > { %p2521_p10 = scmp.ne.s32.totalorder %s3040_s14, %s2520_s12  ;;  %p2528_p13 = scmp.lt.s32.totalorder %s3040_s14, %s3040_s14 }
  0xf1   : > { %p2529_p0 = scmp.lt.s32.totalorder %s2527_s20, %s2520_s12 }
  0xf2   : > { %p2523_p11 = pnand %p2521_p10, %p2919_p8 }
  0xf3   : > { %p2530_p2 = por %p2529_p0, %p2528_p13 }
  0xf4   : > { %p2524_p12 = pneg %p2523_p11 }
  0xf6   : > { %p2531_p5 = pnand %p2530_p2, %p2524_p12 }
  0xf8   : > { %2534 = shalt.err (!%p2531_p5)
}
  0xf9   : > { %2159 = dma.hbm_to_vmem [thread:$0]  (!%p2903_p6), %s3569_s8, 16, %s3040_s14, [#allocation21]  }
  0xfa   : > { %s2773_s30 = smov [#allocation25]   ;;  %s2774_s28 = smov [#allocation26]  }
  0xfb   : > { %s456_s1 = sshll.u32 %s2773_s30, 4  ;;  %s470_s17 = sshll.u32 %s2774_s28, 4  ;;  %s457_s1 = int_to_ptr.vmem [resolvable:$true] %s456_s1  ;;  %s3087_s17 = int_to_ptr.vmem [resolvable:$true] %s470_s17 }
  0xfc   : > { %s2535_s2 = scalar_lea.hbm %s3537_s10, 256 }
  0xfd   : > { %p2536_p7 = scmp.ne.s32.totalorder %s3537_s10, %s2535_s2  ;;  %p2542_p1 = scmp.lt.u32.totalorder %s2535_s2, %s3537_s10 }
  0xff   : > { %p2538_p9 = pnand %p2536_p7, %p2919_p8 }
 0x101   : > { %p2539_p4 = pneg %p2538_p9 }
 0x103   : > { %p2544_p3 = pnand %p2542_p1, %p2539_p4 }
 0x105   : > { %2547 = shalt.err (!%p2544_p3)
}
 0x106   : > { %s2548_s18 = scalar_lea.vmem %s457_s1, 256  ;;  %p2556_p13 = scmp.lt.s32.totalorder %s457_s1, %s457_s1 }
 0x107   : > { %p2549_p10 = scmp.ne.s32.totalorder %s457_s1, %s2548_s18  ;;  %p2557_p0 = scmp.lt.s32.totalorder %s2548_s18, %s2548_s18 }
 0x109   : > { %p2551_p11 = pnand %p2549_p10, %p2919_p8  ;;  %p2558_p2 = por %p2557_p0, %p2556_p13 }
 0x10b   : > { %p2552_p12 = pneg %p2551_p11 }
 0x10d   : > { %p2559_p5 = pnand %p2558_p2, %p2552_p12 }
 0x10f   : > { %2562 = shalt.err (!%p2559_p5)
}
 0x110   : > { %2165 = dma.hbm_to_vmem [thread:$0]  (!%p2903_p6), %s3537_s10, 256, %s457_s1, [#allocation24], %s2769_s24, %s2769_s24, %s2770_s19  }
 0x111   : > { %s2563_s2 = scalar_lea.hbm %s3538_s11, 16 }
 0x112   : > { %p2564_p7 = scmp.ne.s32.totalorder %s3538_s11, %s2563_s2  ;;  %p2570_p1 = scmp.lt.u32.totalorder %s2563_s2, %s3538_s11 }
 0x114   : > { %p2566_p9 = pnand %p2564_p7, %p2919_p8 }
 0x116   : > { %p2567_p4 = pneg %p2566_p9 }
 0x118   : > { %p2572_p3 = pnand %p2570_p1, %p2567_p4 }
 0x11a   : > { %2575 = shalt.err (!%p2572_p3)
}
 0x11b   : > { %s2576_s24 = scalar_lea.vmem %s3087_s17, 16  ;;  %s2583_s19 = scalar_lea.vmem %s3087_s17, 32 }
 0x11c   : > { %p2577_p10 = scmp.ne.s32.totalorder %s3087_s17, %s2576_s24  ;;  %p2584_p13 = scmp.lt.s32.totalorder %s3087_s17, %s3087_s17 }
 0x11d   : > { %p2585_p0 = scmp.lt.s32.totalorder %s2583_s19, %s2576_s24 }
 0x11e   : > { %p2579_p11 = pnand %p2577_p10, %p2919_p8 }
 0x11f   : > { %p2586_p2 = por %p2585_p0, %p2584_p13 }
 0x120   : > { %p2580_p12 = pneg %p2579_p11 }
 0x122   : > { %p2587_p5 = pnand %p2586_p2, %p2580_p12 }
 0x124   : > { %2590 = shalt.err (!%p2587_p5)
}
 0x125   : > { %2168 = dma.hbm_to_vmem [thread:$0]  (!%p2903_p6), %s3538_s11, 16, %s3087_s17, [#allocation27]  }
 0x126   : > { %s1910_s13 = sadd.s32 4294967294, %s2761_s26   ;;  %s55_s30 = sadd.s32 1, %s2757_s25 }
 0x127   : > { %p57_p8 = scmp.ge.s32.totalorder %s55_s30, 2  ;;  %s62_s15 = sadd.s32 1, %s2749_s23 }
 0x128   : > { %p69_p7 = scmp.ne.s32.totalorder %s2749_s23, %s2745_s22  ;;  %p70_p9 = scmp.eq.s32.totalorder %s2761_s26, 0 }
 0x129   : > { %s3603_s30 = smov (%p57_p8, %s55_s30), 0  ;;  %p75_p1 = scmp.ne.s32.totalorder %s2745_s22, %s2741_s21 }
 0x12a   : > { %p3142_p4 = por %p70_p9, %p69_p7  ;;  %s59_s17 = ssub.s32 %s2757_s25, %s3603_s30 }
 0x12b   : > { %p339_p6 = scmp.eq.s32.totalorder %s2889_s27, 1  ;;  %p60_p3 = scmp.eq.s32.totalorder %s59_s17, 0 }
 0x12c   : > { %p3571_p10 = scmp.eq.s32.totalorder %s2889_s27, 0  ;;  %p345_p13 = scmp.eq.s32.totalorder %s1910_s13, 1 }
 0x12d   : > { %p3157_p12 = por %p339_p6, %p69_p7  ;;  %p2190_p2 = scmp.lt.s32.totalorder %s2761_s26, 2 }
 0x12e   : > { %p3153_p11 = por %p3571_p10, %p75_p1  ;;  %p3164_p0 = por %p345_p13, %p75_p1 }
 0x12f   : > { %s3573_s29 = scalar_select %p3157_p12, 1, 0 }
 0x130   : > { %s3572_s16 = scalar_select %p3153_p11, 1, 0 }
 0x131   : > { %s3162_s2 = scalar_select %p60_p3, %s2749_s23, %s62_s15  }
 0x132   : > { %s3574_s12 = scalar_select %p3164_p0, 1, 0 }
 0x133   : > { %s481_s20 = sand.u32 1, %s2749_s23   ;;  %s1924_s3 = sshll.u32 %s2757_s25, 7 }
 0x134   : > { %s3171_s14 = sshll.u32 %s481_s20, 3  ;;  %s3176_s1 = scalar_lea.hbm %s3527_s0, %s1924_s3 }
 0x135   : > { %s485_s18 = scalar_lea.vmem [#allocation8], %s3171_s14  ;;  %p3181_p5 = pnand %p2190_p2, %p3142_p4 }
 0x136   : > { %s492_s13 = sshll.u32 %s485_s18, 4  ;;  %s3576_s19 = sld [smem:[#allocation40_spill]]  ;;  %s3185_s13 = int_to_ptr.vmem [resolvable:$true] %s492_s13 }
 0x137   : > { %s482_s5 = scalar_lea.sflag [#allocation9], %s481_s20  ;;  %s2591_s6 = scalar_lea.hbm %s3176_s1, 128 }
 0x138   : > { %p2592_p8 = scmp.ne.s32.totalorder %s3176_s1, %s2591_s6  ;;  %p2593_p7 = pneg %p3181_p5 }
 0x139   : > { %s2596_s7 = scalar_lea.hbm %s3527_s0, 256  ;;  %p2597_p1 = scmp.lt.u32.totalorder %s3176_s1, %s3527_s0 }
 0x13a   : > { %p2594_p9 = pnand %p2593_p7, %p2592_p8  ;;  %p2598_p6 = scmp.lt.u32.totalorder %s2596_s7, %s2591_s6 }
 0x13b   : > { %p2600_p10 = scmp.lt.u32.totalorder %s2591_s6, %s3176_s1 }
 0x13c   : > { %s3190_s4 = scalar_lea.hbm %s3576_s19, %s1924_s3  ;;  %p2595_p4 = pneg %p2594_p9 }
 0x13d   : > { %p2599_p3 = por %p2598_p6, %p2597_p1 }
 0x13f   : > { %p2601_p13 = por %p2600_p10, %p2599_p3 }
 0x141   : > { %p2602_p2 = pnand %p2601_p13, %p2595_p4 }
 0x143   : > { %2605 = shalt.err (!%p2602_p2)
}
 0x144   : > { %s2606_s20 = scalar_lea.vmem %s3185_s13, 128  ;;  %s2775_s3 = smov [#allocation8]  }
 0x145   : > { %p2607_p8 = scmp.ne.s32.totalorder %s3185_s13, %s2606_s20  ;;  %s2611_s17 = sshll.u32 %s2775_s3, 4  ;;  %s2612_s17 = int_to_ptr.vmem [resolvable:$false] %s2611_s17 }
 0x146   : > { %s2613_s8 = scalar_lea.vmem %s2612_s17, 256  ;;  %p2614_p12 = scmp.lt.s32.totalorder %s3185_s13, %s2612_s17 }
 0x147   : > { %p2609_p9 = pnand %p2607_p8, %p2593_p7  ;;  %p2615_p1 = scmp.lt.s32.totalorder %s2613_s8, %s2606_s20 }
 0x149   : > { %p2610_p0 = pneg %p2609_p9  ;;  %p2616_p6 = por %p2615_p1, %p2614_p12 }
 0x14b   : > { %p2617_p3 = pnand %p2616_p6, %p2610_p0 }
 0x14d   : > { %2620 = shalt.err (!%p2617_p3)
}
 0x14e   : > { %2172 = dma.hbm_to_vmem [thread:$0]  (!%p3181_p5), %s3176_s1, 128, %s3185_s13, %s482_s5  }
 0x14f   : > { %s499_s6 = sand.u32 1, %s2761_s26   ;;  %s503_s7 = scalar_lea.vmem [#allocation11], %s3171_s14 }
 0x150   : > { %s511_s9 = sshll.u32 %s503_s7, 4  ;;  %s500_s24 = scalar_lea.sflag [#allocation12], %s499_s6  ;;  %s512_s9 = int_to_ptr.vmem [resolvable:$true] %s511_s9 }
 0x151   : > { %s2621_s28 = scalar_lea.hbm %s3190_s4, 128  ;;  %s2626_s3 = scalar_lea.hbm %s3576_s19, 256 }
 0x152   : > { %p2622_p12 = scmp.ne.s32.totalorder %s3190_s4, %s2621_s28  ;;  %p2627_p10 = scmp.lt.u32.totalorder %s3190_s4, %s3576_s19 }
 0x153   : > { %p2628_p13 = scmp.lt.u32.totalorder %s2626_s3, %s2621_s28  ;;  %p2630_p8 = scmp.lt.u32.totalorder %s2621_s28, %s3190_s4 }
 0x154   : > { %p2624_p0 = pnand %p2622_p12, %p2593_p7 }
 0x155   : > { %p2629_p2 = por %p2628_p13, %p2627_p10 }
 0x156   : > { %p2625_p4 = pneg %p2624_p0 }
 0x157   : > { %p2631_p9 = por %p2630_p8, %p2629_p2 }
 0x159   : > { %p2632_p1 = pnand %p2631_p9, %p2625_p4 }
 0x15b   : > { %2635 = shalt.err (!%p2632_p1)
}
 0x15c   : > { %s2636_s5 = scalar_lea.vmem %s512_s9, 128  ;;  %s2776_s14 = smov [#allocation11]  }
 0x15d   : > { %p2637_p6 = scmp.ne.s32.totalorder %s512_s9, %s2636_s5  ;;  %s2641_s1 = sshll.u32 %s2776_s14, 4  ;;  %s2642_s1 = int_to_ptr.vmem [resolvable:$false] %s2641_s1 }
 0x15e   : > { %s2643_s13 = scalar_lea.vmem %s2642_s1, 256  ;;  %p2644_p0 = scmp.lt.s32.totalorder %s512_s9, %s2642_s1 }
 0x15f   : > { %p2639_p3 = pnand %p2637_p6, %p2593_p7  ;;  %p2645_p11 = scmp.lt.s32.totalorder %s2643_s13, %s2636_s5 }
 0x161   : > { %p2640_p12 = pneg %p2639_p3  ;;  %p2646_p10 = por %p2645_p11, %p2644_p0 }
 0x163   : > { %p2647_p13 = pnand %p2646_p10, %p2640_p12 }
 0x165   : > { %2650 = shalt.err (!%p2647_p13)
}
 0x166   : > { %2175 = dma.hbm_to_vmem [thread:$0]  (!%p3181_p5), %s3190_s4, 128, %s512_s9, %s500_s24  }
 0x167   : > { %s3577_s6 = sld [smem:[#allocation39_spill]] }
 0x16d   : > { %p3578_p4 = scmp.ne.s32.totalorder %s3577_s6, 0 }
 0x16e   : > { %s3241_s7 = sand.u32 (!%p3578_p4), 1, %s2745_s22   ;;  %p3579_p11 = scmp.ne.s32.totalorder (!%p3578_p4), %s3572_s16, 0 }
 0x16f   : > { %520 = sbr.rel (%p3578_p4) target bundleno = 2632 (0xa48), region = 68  ;;  %s3244_s28 = sshll.u32 (!%p3578_p4), %s3241_s7, 3 }
 0x170   : > { %s523_s18 = scalar_lea.sflag (!%p3578_p4), [#allocation9], %s3241_s7  ;;  %s526_s20 = scalar_lea.vmem (!%p3578_p4), [#allocation8], %s3244_s28 }
 0x176   : > { %2704 = dma.done.wait (%p3579_p11), %s523_s18, 128  }
 0x177   : > { %2706 = vsyncadd (%p3579_p11), %s523_s18, 4294967168  ;;  %s531_s4 = sand.u32 1, %s2889_s27   ;;  %s535_s9 = scalar_lea.vmem [#allocation11], %s3244_s28 }
 0x178   : > { %s532_s15 = scalar_lea.sflag [#allocation12], %s531_s4 }
 0x179   : > { %2708 = dma.done.wait (%p3579_p11), %s532_s15, 128  }
 0x17a   : > { %2710 = vsyncadd (%p3579_p11), %s532_s15, 4294967168  ;;  %p3580_p5 = scmp.eq.s32.totalorder %s2889_s27, 0 }
 0x17c   : > { %2712 = dma.done.wait (%p3580_p5), [#allocation12], 16   ;;  %p3581_p7 = pmov %p3580_p5 }
 0x17d   : > { %p3582_p2 = pmov %p3580_p5 }
 0x17e   : > { %2714 = vsyncadd (%p3581_p7), [#allocation12], 4294967280 }
 0x17f   : > { %2716 = dma.done.wait (%p3582_p2), [#allocation15], 272   ;;  %p3583_p8 = pmov %p3582_p2 }
 0x180   : > { %p3584_p9 = pmov %p3582_p2 }
 0x181   : > { %2718 = vsyncadd (%p3583_p8), [#allocation15], 4294967024 }
 0x182   : > { %2720 = dma.done.wait (%p3584_p9), [#allocation18], 272   ;;  %p3585_p1 = pmov %p3582_p2 }
 0x184   : > { %2722 = vsyncadd (%p3585_p1), [#allocation18], 4294967024  ;;  %p3586_p6 = pmov %p3585_p1 }
 0x185   : > { %p3587_p3 = pmov %p3585_p1 }
 0x186   : > { %2724 = dma.done.wait (%p3586_p6), [#allocation21], 32  }
 0x187   : > { %2726 = vsyncadd (%p3587_p3), [#allocation21], 4294967264  ;;  %p3588_p12 = pmov %p3585_p1 }
 0x188   : > { %p3589_p0 = pmov %p3585_p1 }
 0x189   : > { %2728 = dma.done.wait (%p3588_p12), [#allocation24], 272  }
 0x18a   : > { %2730 = vsyncadd (%p3589_p0), [#allocation24], 4294967024  ;;  %p3590_p10 = pmov %p3589_p0 }
 0x18b   : > { %p3591_p13 = pmov %p3589_p0 }
 0x18c   : > { %2732 = dma.done.wait (%p3590_p10), [#allocation27], 16  }
 0x18d   : > { %2734 = vsyncadd (%p3591_p13), [#allocation27], 4294967280  ;;  %vm631_vm0 = vcmask 261120   ;;  %v628_v0 = vld [vmem:[%s526_s20] sm:$0xff]  ;;  %v2777_v8 = vmov 0.0   ;;  %vm2778_vm1 = vmmov 0  }
 0x18e   : > { %v632_v1 = vsel %vm631_vm0, %v628_v0, 0.0  ;;  %v2279_v7 = vld [vmem:[#allocation16] sm:$0xff]   ;;  %2004 = vmatprep.subr.bf16.mxu0 %v2777_v8  ;;  %2008 = vmatprep.mubr.msk.bf16.mxu0 %vm2778_vm1, %v2777_v8  ;;  %v2280_v9 = vld [vmem:[#allocation16 + $0x8] sm:$0xff]   ;;  %v1941_v14 = vld [vmem:[#allocation13] ss:$0 sm:$0xff]  ;;  %vm803_vm2 = vcmask 64512  }
 0x18f   : > { %633 = vadd.xlane.f32.xlu0 %v632_v1  ;;  %2005 = vmatpush3.bf16.msra.mxu0 %v2279_v7  ;;  %v1942_v16 = vld [vmem:[#allocation14] ss:$0 sm:$0xff]  ;;  %v1943_v20 = vld [vmem:[#allocation17] ss:$0 sm:$0xff]  ;;  %804 = vst.msk [vmem:[#allocation7] sm:$0xff] %vm803_vm2, %v2777_v8  ;;  %805 = vst.msk [vmem:[#allocation7 + $0x8] sm:$0xff] %vm803_vm2, %v2777_v8 }
 0x190   : > { %2012 = vmatprep.subr.bf16.mxu1 %v2777_v8  ;;  %2006 = vmatprep.subr.bf16.mxu0 %v2777_v8  ;;  %806 = vst.msk [vmem:[#allocation7 + $0x10] sm:$0xff] %vm803_vm2, %v2777_v8  ;;  %807 = vst.msk [vmem:[#allocation7 + $0x18] sm:$0xff] %vm803_vm2, %v2777_v8  ;;  %vm730_vm3 = vcmask 60416   ;;  %s2779_s27 = smov 80   ;;  %s2780_s16 = smov 96   ;;  %vm794_vm4 = vcmask 7168  }
 0x191   : > { %2014 = vmatprep.mubr.msk.bf16.mxu1 %vm2778_vm1, %v2777_v8  ;;  %s2781_s24 = smov 88   ;;  %s2782_s3 = smov 72   ;;  %v2786_v48 = vmov -inf   ;;  %799 = vst.msk [vmem:[#allocation6] sm:$0xff] %vm794_vm4, %v2777_v8  ;;  %800 = vst.msk [vmem:[#allocation6 + $0x8] sm:$0xff] %vm794_vm4, %v2777_v8  ;;  %vm1145_vm5 = vcmask 1043456  }
 0x192   : > { %s2783_s17 = smov 120   ;;  %s2784_s8 = smov 112   ;;  %795 = vst.msk [vmem:[#allocation5] sm:$0xff] %vm794_vm4, %v2786_v48  ;;  %796 = vst.msk [vmem:[#allocation5 + $0x8] sm:$0xff] %vm794_vm4, %v2786_v48 }
 0x193   : > { %2007 = vmatpush3.bf16.msra.mxu0 %v2280_v9  ;;  %s2785_s5 = smov 104   ;;  %797 = vst.msk [vmem:[#allocation5 + $0x10] sm:$0xff] %vm794_vm4, %v2786_v48  ;;  %798 = vst.msk [vmem:[#allocation5 + $0x18] sm:$0xff] %vm794_vm4, %v2786_v48  ;;  %s2788_s14 = smov 64  }
 0x194   : > { %2018 = vmatprep.subr.bf16.mxu0 %v2777_v8  ;;  %801 = vst.msk [vmem:[#allocation6 + $0x10] sm:$0xff] %vm794_vm4, %v2777_v8  ;;  %802 = vst.msk [vmem:[#allocation6 + $0x18] sm:$0xff] %vm794_vm4, %v2777_v8  ;;  %s2789_s1 = smov 56   ;;  %s2790_s13 = smov 48  }
 0x195   : > { %s2791_s6 = smov 40   ;;  %s3592_s18 = sld [smem:[#allocation38_spill]] }
 0x196   : > { %s620_s4 = scalar_lea.vmem [#allocation28], %s3244_s28  ;;  %p3594_p11 = scmp.ne.s32.totalorder %s3573_s29, 0 }
 0x197   : > { %s1702_s15 = sshll.u32 %s620_s4, 4  ;;  %s3479_s15 = int_to_ptr.vmem [resolvable:$true] %s1702_s15 }
 0x198   : > { %s2651_s28 = scalar_lea.vmem %s3479_s15, 128 }
 0x199   : > { %p2652_p4 = scmp.ne.s32.totalorder %s3479_s15, %s2651_s28 }
 0x19b   : > { %s1969_s20 = sshll.u32 %s3592_s18, 7  ;;  %p2653_p5 = pnand %p2652_p4, %p3594_p11 }
 0x19d   : > { %p2654_p7 = pneg %p2653_p5 }
 0x21c   : > { %v634_v2 = vpop.xlane.xlu0 %633 }
 0x21d   : > { %v636_v3 = vmul.f32 0.03125, %v634_v2 }
 0x21f   : > { %v637_v4 = vsub.f32 %v628_v0, %v636_v3 }
 0x221   : > { %v638_v5 = vmul.f32 %v637_v4, %v637_v4 }
 0x223   : > { %v639_v6 = vsel %vm631_vm0, %v638_v5, 0.0  ;;  %v2787_v5 = vmov 0  }
 0x224   : > { %640 = vadd.xlane.f32.xlu0 %v639_v6  ;;  %2277 = vset.pattern.permute.xlu1 %v2787_v5  ;;  %v3353_v6 = vld [vmem:[#allocation5] sm:$0xff] }
 0x225   : > { %2278 = vset.pattern.permute.xlu0 %v2787_v5  ;;  %v1081_v5 = vld [vmem:[#allocation6] sm:$0xff] }
 0x2b1   : > { %v641_v10 = vpop.xlane.xlu0 %640 }
 0x2b2   : > { %v642_v11 = vmul.f32 0.03125, %v641_v10  ;;  %v3358_v10 = vld [vmem:[#allocation5 + $0x8] sm:$0xff] }
 0x2b4   : > { %v643_v12 = vadd.f32 1e-06, %v642_v11 }
 0x2b6   : > { %2283 = vrsqrt.f32 %v643_v12 }
 0x2c0   : > { %v2284_v13 = vpop.eup %2283 }
 0x2c1   : > { %v645_v15 = vmul.f32 %v2284_v13, %v637_v4 }
 0x2c3   : > { %v652_v17 = vmul.f32 %v1941_v14, %v645_v15  ;;  %v3368_v14 = vld [vmem:[#allocation5 + $0x10] sm:$0xff] }
 0x2c5   : > { %v659_v18 = vadd.f32 %v1942_v16, %v652_v17 }
 0x2c7   : > { %v660_v19 = vpack.c.bf16 %v659_v18, %v659_v18  ;;  %v3379_v18 = vld [vmem:[#allocation5 + $0x18] sm:$0xff] }
 0x2c9   : > { %2009 = vmatmul.mubr.msk.bf16.vlgmr.msra.gmra.mrb[0].mxu0 %vm631_vm0, %v660_v19 }
 0x2ca   : > { %2020 = vmatprep.mubr.msk.bf16.mxu0 %vm2778_vm1, %v2777_v8 }
 0x39c   : > { %v721_v21 = vpop.f32.mrb[0].mxu0 }
 0x39d   : > { %v722_v22 = vadd.f32 %v1943_v20, %v721_v21  ;;  %v2010_v23 = vpop.f32.mrb[1].mxu0 }
 0x39e   : > { %v724_v24 = vpop.f32.mrb[2].mxu0 }
 0x39f   : > { %v727_v25 = vmul.f32 0.35355338, %v722_v22  ;;  %v3303_v26 = vpack.c.bf16 %v722_v22, %v722_v22  ;;  %v2011_v27 = vpop.f32.mrb[3].mxu0 }
 0x3a1   : > { %v728_v28 = vpack.c.bf16 %v727_v25, %v727_v25  ;;  %766 = vrot.lane.b32.xlu0 %v3303_v26, %s2779_s27  ;;  %735 = vrot.lane.b32.xlu1 %v3303_v26, %s2780_s16  ;;  %s3593_s16 = sld [smem:[#allocation49_spill]] }
 0x3a3   : > { %731 = vst.msk [vmem:[#allocation2] sm:$0xf] %vm730_vm3, %v728_v28 }
 0x3a5   : > { %751 = vrot.lane.b32.xlu1 %v3303_v26, %s2781_s24 }
 0x3a7   : > { %s3477_s24 = scalar_lea.hbm %s3593_s16, %s1969_s20 }
 0x3a9   : > { %781 = vrot.lane.b32.xlu1 %v3303_v26, %s2782_s3  ;;  %s1688_s3 = scalar_lea.sflag [#allocation10], %s3241_s7 }
 0x3aa   : > { %v814_v40 = vld [vmem:[#allocation2] sm:$0xf] }
 0x3ad   : > { %746 = vrot.lane.b32.xlu1 %v728_v28, %s2783_s17  ;;  %s2792_s17 = smov [#allocation28]  }
 0x3b1   : > { %761 = vrot.lane.b32.xlu1 %v728_v28, %s2784_s8  ;;  %s2655_s8 = sshll.u32 %s2792_s17, 4  ;;  %s2656_s8 = int_to_ptr.vmem [resolvable:$false] %s2655_s8 }
 0x3b2   : > { %p2658_p2 = scmp.lt.s32.totalorder %s3479_s15, %s2656_s8 }
 0x3b5   : > { %776 = vrot.lane.b32.xlu1 %v728_v28, %s2785_s5  ;;  %s2657_s5 = scalar_lea.vmem %s2656_s8, 256 }
 0x3b6   : > { %p2659_p8 = scmp.lt.s32.totalorder %s2657_s5, %s2651_s28 }
 0x3b8   : > { %p2660_p9 = por %p2659_p8, %p2658_p2 }
 0x3ba   : > { %p2661_p1 = pnand %p2660_p9, %p2654_p7 }
 0x413   : > { %v767_v29 = vpop.permute.xlu0 %766  ;;  %v736_v30 = vpop.permute.xlu1 %735 }
 0x414   : > { %770 = vst.msk [vmem:[#allocation3 + $0x8] sm:$0xf] %vm730_vm3, %v767_v29  ;;  %738 = vst.msk [vmem:[#allocation3] sm:$0xf] %vm730_vm3, %v736_v30 }
 0x417   : > { %v752_v31 = vpop.permute.xlu1 %751 }
 0x418   : > { %755 = vst.msk [vmem:[#allocation3 + $0x4] sm:$0xf] %vm730_vm3, %v752_v31 }
 0x41b   : > { %v782_v32 = vpop.permute.xlu1 %781  ;;  %v822_v33 = vld [vmem:[#allocation3] sm:$0xf]  ;;  %v824_v38 = vld [vmem:[#allocation3 + $0x8] sm:$0xf] }
 0x41c   : > { %785 = vst.msk [vmem:[#allocation3 + $0xc] sm:$0xf] %vm730_vm3, %v782_v32  ;;  %v837_v34 = vsel %vm803_vm2, %v822_v33, 0  ;;  %v929_v41 = vsel %vm803_vm2, %v824_v38, 0 }
 0x41d   : > { %2013 = vmatpush3.bf16.xpose.msra.mxu1 %v837_v34 }
 0x41e   : > { %2024 = vmatprep.subr.bf16.mxu1 %v2777_v8 }
 0x41f   : > { %v747_v35 = vpop.permute.xlu1 %746  ;;  %v823_v36 = vld [vmem:[#allocation3 + $0x4] sm:$0xf] }
 0x420   : > { %750 = vst.msk [vmem:[#allocation2 + $0x4] sm:$0xf] %vm730_vm3, %v747_v35  ;;  %v883_v37 = vsel %vm803_vm2, %v823_v36, 0 }
 0x421   : > { %2019 = vmatpush3.bf16.xpose.msra.mxu0 %v883_v37 }
 0x422   : > { %2030 = vmatprep.subr.bf16.mxu0 %v2777_v8 }
 0x423   : > { %v762_v39 = vpop.permute.xlu1 %761  ;;  %v825_v42 = vld [vmem:[#allocation3 + $0xc] sm:$0xf] }
 0x424   : > { %765 = vst.msk [vmem:[#allocation2 + $0x8] sm:$0xf] %vm730_vm3, %v762_v39  ;;  %2015 = vmatmul.mubr.msk.bf16.vlgmr.msra.gmra.mrb[0].mxu1 %vm803_vm2, %v814_v40  ;;  %v975_v45 = vsel %vm803_vm2, %v825_v42, 0 }
 0x425   : > { %2025 = vmatpush3.bf16.xpose.msra.mxu1 %v929_v41  ;;  %2026 = vmatprep.mubr.msk.bf16.mxu1 %vm2778_vm1, %v2777_v8 }
 0x426   : > { %2036 = vmatprep.subr.bf16.mxu1 %v2777_v8 }
 0x427   : > { %v777_v43 = vpop.permute.xlu1 %776  ;;  %v815_v44 = vld [vmem:[#allocation2 + $0x4] sm:$0xf] }
 0x428   : > { %780 = vst.msk [vmem:[#allocation2 + $0xc] sm:$0xf] %vm730_vm3, %v777_v43  ;;  %2021 = vmatmul.mubr.msk.bf16.vlgmr.msra.gmra.mrb[4].mxu0 %vm803_vm2, %v815_v44 }
 0x429   : > { %2031 = vmatpush3.bf16.xpose.msra.mxu0 %v975_v45  ;;  %2032 = vmatprep.mubr.msk.bf16.mxu0 %vm2778_vm1, %v2777_v8 }
 0x42a   : > { %2042 = vmatprep.subr.bf16.mxu0 %v2777_v8 }
 0x42b   : > { %v816_v46 = vld [vmem:[#allocation2 + $0x8] sm:$0xf] }
 0x42c   : > { %2027 = vmatmul.mubr.msk.bf16.vlgmr.msra.gmra.mrb[4].mxu1 %vm803_vm2, %v816_v46 }
 0x42d   : > { %2038 = vmatprep.mubr.msk.bf16.mxu1 %vm2778_vm1, %v2777_v8 }
 0x42f   : > { %v817_v47 = vld [vmem:[#allocation2 + $0xc] sm:$0xf] }
 0x430   : > { %2033 = vmatmul.mubr.msk.bf16.vlgmr.msra.gmra.mrb[8].mxu0 %vm803_vm2, %v817_v47 }
 0x431   : > { %2044 = vmatprep.mubr.msk.bf16.mxu0 %vm2778_vm1, %v2777_v8 }
 0x4f7   : > { %v873_v49 = vpop.f32.mrb[0].mxu1 }
 0x4f8   : > { %v2016_v50 = vpop.f32.mrb[1].mxu1  ;;  %v1021_v51 = vsel %vm803_vm2, %v873_v49, -inf }
 0x4f9   : > { %1022 = vmax.xlane.f32.xlu1 %v1021_v51  ;;  %v876_v52 = vpop.f32.mrb[2].mxu1 }
 0x4fa   : > { %v2017_v53 = vpop.f32.mrb[3].mxu1 }
 0x4fb   : > { %v919_v54 = vpop.f32.mrb[4].mxu0 }
 0x4fc   : > { %v2022_v55 = vpop.f32.mrb[5].mxu0  ;;  %v1024_v56 = vsel %vm803_vm2, %v919_v54, -inf }
 0x4fd   : > { %1025 = vmax.xlane.f32.xlu0 %v1024_v56  ;;  %v922_v57 = vpop.f32.mrb[6].mxu0 }
 0x4fe   : > { %v2023_v58 = vpop.f32.mrb[7].mxu0 }
 0x4ff   : > { %v965_v59 = vpop.f32.mrb[4].mxu1 }
 0x500   : > { %v2028_v60 = vpop.f32.mrb[5].mxu1  ;;  %v1027_v61 = vsel %vm803_vm2, %v965_v59, -inf }
 0x501   : > { %1028 = vmax.xlane.f32.xlu1 %v1027_v61  ;;  %v968_v62 = vpop.f32.mrb[6].mxu1 }
 0x502   : > { %v2029_v63 = vpop.f32.mrb[7].mxu1 }
 0x503   : > { %v1011_v0 = vpop.f32.mrb[8].mxu0 }
 0x504   : > { %v2034_v1 = vpop.f32.mrb[9].mxu0  ;;  %v1030_v2 = vsel %vm803_vm2, %v1011_v0, -inf }
 0x505   : > { %1031 = vmax.xlane.f32.xlu0 %v1030_v2  ;;  %v1014_v3 = vpop.f32.mrb[10].mxu0 }
 0x506   : > { %v2035_v4 = vpop.f32.mrb[11].mxu0  ;;  %v1382_v3 = vld [vmem:[#allocation19] sm:$0xf] }
 0x507   : > { %v1390_v4 = vsel %vm1145_vm5, %v1382_v3, 0 }
 0x586   : > { %v1023_v7 = vpop.xlane.xlu1 %1022 }
 0x587   : > { %v3356_v9 = vmax.f32 %v3353_v6, %v1023_v7 }
 0x589   : > { %v1037_v11 = vsub.f32 %v3353_v6, %v3356_v9  ;;  %1335 = vst.msk [vmem:[#allocation5] sm:$0xff] %vm794_vm4, %v3356_v9  ;;  %1051 = vperm.xlu1 %2277, %v3356_v9   ;;  %v1082_v9 = vld [vmem:[#allocation6 + $0x8] sm:$0xff] }
 0x58a   : > { %v1026_v12 = vpop.xlane.xlu0 %1025 }
 0x58b   : > { %v3366_v13 = vmax.f32 %v3358_v10, %v1026_v12  ;;  %v1041_v57 = vmul.f32 1.442695, %v1037_v11 }
 0x58d   : > { %v1038_v15 = vsub.f32 %v3358_v10, %v3366_v13  ;;  %1336 = vst.msk [vmem:[#allocation5 + $0x8] sm:$0xff] %vm794_vm4, %v3366_v13  ;;  %739 = vrot.lane.b32.xlu1 %v3303_v26, %s2788_s14  ;;  %1056 = vperm.xlu0 %2278, %v3366_v13   ;;  %v1083_v13 = vld [vmem:[#allocation6 + $0x10] sm:$0xff] }
 0x58e   : > { %v1029_v16 = vpop.xlane.xlu1 %1028 }
 0x58f   : > { %v3377_v17 = vmax.f32 %v3368_v14, %v1029_v16  ;;  %v1043_v55 = vmul.f32 1.442695, %v1038_v15 }
 0x591   : > { %v1039_v19 = vsub.f32 %v3368_v14, %v3377_v17  ;;  %1337 = vst.msk [vmem:[#allocation5 + $0x10] sm:$0xff] %vm794_vm4, %v3377_v17  ;;  %1061 = vperm.xlu1 %2277, %v3377_v17   ;;  %v1084_v17 = vld [vmem:[#allocation6 + $0x18] sm:$0xff] }
 0x592   : > { %v1032_v20 = vpop.xlane.xlu0 %1031 }
 0x593   : > { %v3387_v21 = vmax.f32 %v3379_v18, %v1032_v20  ;;  %v1045_v60 = vmul.f32 1.442695, %v1039_v19 }
 0x595   : > { %v1040_v22 = vsub.f32 %v3379_v18, %v3387_v21  ;;  %1338 = vst.msk [vmem:[#allocation5 + $0x18] sm:$0xff] %vm794_vm4, %v3387_v21  ;;  %1066 = vperm.xlu1 %2277, %v3387_v21  }
 0x597   : > { %v1047_v62 = vmul.f32 1.442695, %v1040_v22 }
 0x599   : > { %756 = vrot.lane.b32.xlu1 %v3303_v26, %s2789_s1 }
 0x59d   : > { %771 = vrot.lane.b32.xlu1 %v3303_v26, %s2790_s13 }
 0x5a1   : > { %786 = vrot.lane.b32.xlu1 %v3303_v26, %s2791_s6 }
 0x608   : > { %v1052_v23 = vpop.permute.xlu1 %1051 }
 0x609   : > { %v1069_v24 = vsub.f32 %v873_v49, %v1052_v23 }
 0x60b   : > { %v1073_v25 = vmul.f32 1.442695, %v1069_v24 }
 0x60c   : > { %v740_v27 = vpop.permute.xlu1 %739  ;;  %v1057_v28 = vpop.permute.xlu0 %1056 }
 0x60d   : > { %2285 = vpow2.f32 %v1073_v25  ;;  %742 = vst.msk [vmem:[#allocation4] sm:$0xf] %vm730_vm3, %v740_v27  ;;  %v1070_v29 = vsub.f32 %v919_v54, %v1057_v28  ;;  %v1383_v28 = vld [vmem:[#allocation19 + $0x4] sm:$0xf] }
 0x60f   : > { %v1075_v30 = vmul.f32 1.442695, %v1070_v29 }
 0x610   : > { %v1062_v31 = vpop.permute.xlu1 %1061 }
 0x611   : > { %2287 = vpow2.f32 %v1075_v30  ;;  %v1071_v32 = vsub.f32 %v965_v59, %v1062_v31  ;;  %v1436_v30 = vsel %vm1145_vm5, %v1383_v28, 0 }
 0x613   : > { %v1077_v33 = vmul.f32 1.442695, %v1071_v32 }
 0x614   : > { %v1067_v34 = vpop.permute.xlu1 %1066  ;;  %v828_v35 = vld [vmem:[#allocation4] sm:$0xf] }
 0x615   : > { %2289 = vpow2.f32 %v1077_v33  ;;  %v1072_v36 = vsub.f32 %v1011_v0, %v1067_v34  ;;  %v1147_v26 = vsel %vm1145_vm5, %v828_v35, 0  ;;  %v1110_v33 = vld [vmem:[#allocation7] sm:$0xff] }
 0x616   : > { %2037 = vmatpush3.bf16.msra.mxu1 %v1147_v26 }
 0x617   : > { %v2286_v37 = vpop.eup %2285  ;;  %v1079_v38 = vmul.f32 1.442695, %v1072_v36  ;;  %2048 = vmatprep.subr.bf16.mxu1 %v2777_v8 }
 0x618   : > { %v757_v39 = vpop.permute.xlu1 %756  ;;  %v1089_v40 = vsel %vm803_vm2, %v2286_v37, 0.0  ;;  %v1138_v41 = vpack.c.bf16 %v2286_v37, %v2286_v37 }
 0x619   : > { %2291 = vpow2.f32 %v1079_v38  ;;  %760 = vst.msk [vmem:[#allocation4 + $0x4] sm:$0xf] %vm730_vm3, %v757_v39  ;;  %1090 = vadd.xlane.f32.xlu1 %v1089_v40 }
 0x61a   : > { %2039 = vmatmul.mubr.msk.bf16.vlgmr.msra.gmra.mrb[8].mxu1 %vm803_vm2, %v1138_v41  ;;  %2293 = vpow2.f32 %v1043_v55  ;;  %v1111_v41 = vld [vmem:[#allocation7 + $0x8] sm:$0xff] }
 0x61b   : > { %v2288_v42 = vpop.eup %2287  ;;  %2050 = vmatprep.mubr.msk.bf16.mxu1 %vm2778_vm1, %v2777_v8  ;;  %2295 = vpow2.f32 %v1041_v57 }
 0x61c   : > { %v772_v43 = vpop.permute.xlu1 %771  ;;  %v1092_v44 = vsel %vm803_vm2, %v2288_v42, 0.0  ;;  %v1139_v51 = vpack.c.bf16 %v2288_v42, %v2288_v42  ;;  %2297 = vpow2.f32 %v1045_v60 }
 0x61d   : > { %775 = vst.msk [vmem:[#allocation4 + $0x8] sm:$0xf] %vm730_vm3, %v772_v43  ;;  %1093 = vadd.xlane.f32.xlu0 %v1092_v44  ;;  %2299 = vpow2.f32 %v1047_v62  ;;  %v1112_v43 = vld [vmem:[#allocation7 + $0x10] sm:$0xff] }
 0x61f   : > { %v2290_v45 = vpop.eup %2289 }
 0x620   : > { %v787_v46 = vpop.permute.xlu1 %786  ;;  %v1095_v47 = vsel %vm803_vm2, %v2290_v45, 0.0  ;;  %v829_v48 = vld [vmem:[#allocation4 + $0x4] sm:$0xf]  ;;  %v1140_v56 = vpack.c.bf16 %v2290_v45, %v2290_v45 }
 0x621   : > { %790 = vst.msk [vmem:[#allocation4 + $0xc] sm:$0xf] %vm730_vm3, %v787_v46  ;;  %1096 = vadd.xlane.f32.xlu0 %v1095_v47  ;;  %v1193_v49 = vsel %vm1145_vm5, %v829_v48, 0 }
 0x622   : > { %2043 = vmatpush3.bf16.msra.mxu0 %v1193_v49 }
 0x623   : > { %v2292_v50 = vpop.eup %2291  ;;  %2054 = vmatprep.subr.bf16.mxu0 %v2777_v8 }
 0x624   : > { %v1098_v52 = vsel %vm803_vm2, %v2292_v50, 0.0  ;;  %v830_v53 = vld [vmem:[#allocation4 + $0x8] sm:$0xf]  ;;  %v1141_v61 = vpack.c.bf16 %v2292_v50, %v2292_v50  ;;  %v2294_v63 = vpop.eup %2293 }
 0x625   : > { %1099 = vadd.xlane.f32.xlu1 %v1098_v52  ;;  %2045 = vmatmul.mubr.msk.bf16.vlgmr.msra.gmra.mrb[12].mxu0 %vm803_vm2, %v1139_v51  ;;  %v1239_v54 = vsel %vm1145_vm5, %v830_v53, 0  ;;  %v2296_v0 = vpop.eup %2295  ;;  %v1086_v11 = vmul.f32 %v2294_v63, %v1082_v9  ;;  %v1113_v51 = vld [vmem:[#allocation7 + $0x18] sm:$0xff]  ;;  %v1385_v9 = vld [vmem:[#allocation19 + $0xc] sm:$0xf] }
 0x626   : > { %2049 = vmatpush3.bf16.msra.mxu1 %v1239_v54  ;;  %2056 = vmatprep.mubr.msk.bf16.mxu0 %vm2778_vm1, %v2777_v8  ;;  %v2298_v1 = vpop.eup %2297  ;;  %v1085_v6 = vmul.f32 %v2296_v0, %v1081_v5 }
 0x627   : > { %2060 = vmatprep.subr.bf16.mxu1 %v2777_v8  ;;  %v2300_v2 = vpop.eup %2299  ;;  %v1087_v15 = vmul.f32 %v2298_v1, %v1083_v13 }
 0x628   : > { %v831_v58 = vld [vmem:[#allocation4 + $0xc] sm:$0xf]  ;;  %v1088_v20 = vmul.f32 %v2300_v2, %v1084_v17 }
 0x629   : > { %2051 = vmatmul.mubr.msk.bf16.vlgmr.msra.gmra.mrb[12].mxu1 %vm803_vm2, %v1140_v56  ;;  %v1285_v59 = vsel %vm1145_vm5, %v831_v58, 0 }
 0x62a   : > { %2055 = vmatpush3.bf16.msra.mxu0 %v1285_v59  ;;  %2062 = vmatprep.mubr.msk.bf16.mxu1 %vm2778_vm1, %v2777_v8 }
 0x62b   : > { %2066 = vmatprep.subr.bf16.mxu0 %v2777_v8  ;;  %2061 = vmatpush3.bf16.msra.mxu1 %v1390_v4 }
 0x62c   : > { %2072 = vmatprep.subr.bf16.mxu1 %v2777_v8 }
 0x62d   : > { %2057 = vmatmul.mubr.msk.bf16.vlgmr.msra.gmra.mrb[16].mxu0 %vm803_vm2, %v1141_v61 }
 0x62e   : > { %2068 = vmatprep.mubr.msk.bf16.mxu0 %vm2778_vm1, %v2777_v8  ;;  %2067 = vmatpush3.bf16.msra.mxu0 %v1436_v30 }
 0x62f   : > { %2078 = vmatprep.subr.bf16.mxu0 %v2777_v8 }
 0x636   : > { %1121 = vperm.xlu1 %2277, %v2294_v63  }
 0x637   : > { %1116 = vperm.xlu0 %2278, %v2296_v0  }
 0x63a   : > { %1126 = vperm.xlu1 %2277, %v2298_v1  }
 0x63b   : > { %1131 = vperm.xlu0 %2278, %v2300_v2   ;;  %v1384_v2 = vld [vmem:[#allocation19 + $0x8] sm:$0xf] }
 0x63c   : > { %v1482_v5 = vsel %vm1145_vm5, %v1384_v2, 0  ;;  %v1964_v2 = vld [vmem:[#allocation26] ss:$0 sm:$0xff] }
 0x6a6   : > { %v1091_v7 = vpop.xlane.xlu1 %1090 }
 0x6a7   : > { %v1101_v10 = vadd.f32 %v1091_v7, %v1085_v6 }
 0x6a9   : > { %1106 = vst.msk [vmem:[#allocation6] sm:$0xff] %vm794_vm4, %v1101_v10 }
 0x6aa   : > { %v1094_v12 = vpop.xlane.xlu0 %1093 }
 0x6ab   : > { %v1102_v14 = vadd.f32 %v1094_v12, %v1086_v11  ;;  %v1528_v12 = vsel %vm1145_vm5, %v1385_v9, 0 }
 0x6ad   : > { %1107 = vst.msk [vmem:[#allocation6 + $0x8] sm:$0xff] %vm794_vm4, %v1102_v14 }
 0x6ae   : > { %v1097_v16 = vpop.xlane.xlu0 %1096 }
 0x6af   : > { %v1103_v18 = vadd.f32 %v1097_v16, %v1087_v15 }
 0x6b0   : > { %v1346_v19 = vld [vmem:[#allocation6] sm:$0xff] }
 0x6b1   : > { %1108 = vst.msk [vmem:[#allocation6 + $0x10] sm:$0xff] %vm794_vm4, %v1103_v18  ;;  %2301 = vrcp.f32 %v1346_v19 }
 0x6b2   : > { %v1100_v21 = vpop.xlane.xlu1 %1099 }
 0x6b3   : > { %v1104_v22 = vadd.f32 %v1100_v21, %v1088_v20 }
 0x6b4   : > { %v1347_v23 = vld [vmem:[#allocation6 + $0x8] sm:$0xff] }
 0x6b5   : > { %1109 = vst.msk [vmem:[#allocation6 + $0x18] sm:$0xff] %vm794_vm4, %v1104_v22  ;;  %2303 = vrcp.f32 %v1347_v23 }
 0x6b6   : > { %v1117_v34 = vpop.permute.xlu0 %1116  ;;  %v1122_v40 = vpop.permute.xlu1 %1121 }
 0x6b7   : > { %v1134_v35 = vmul.f32 %v1117_v34, %v1110_v33  ;;  %v1135_v42 = vmul.f32 %v1122_v40, %v1111_v41  ;;  %v1961_v40 = vld [vmem:[#allocation20] ss:$0 sm:$0xff] }
 0x6b8   : > { %v1348_v24 = vld [vmem:[#allocation6 + $0x10] sm:$0xff] }
 0x6b9   : > { %2305 = vrcp.f32 %v1348_v24 }
 0x6ba   : > { %v1127_v44 = vpop.permute.xlu1 %1126  ;;  %v1132_v52 = vpop.permute.xlu0 %1131 }
 0x6bb   : > { %v2302_v25 = vpop.eup %2301  ;;  %v1136_v49 = vmul.f32 %v1127_v44, %v1112_v43  ;;  %v1137_v57 = vmul.f32 %v1132_v52, %v1113_v51 }
 0x6bc   : > { %1356 = vperm.xlu1 %2277, %v2302_v25   ;;  %v1349_v27 = vld [vmem:[#allocation6 + $0x18] sm:$0xff] }
 0x6bd   : > { %2307 = vrcp.f32 %v1349_v27 }
 0x6bf   : > { %v2304_v29 = vpop.eup %2303 }
 0x6c0   : > { %1361 = vperm.xlu0 %2278, %v2304_v29  }
 0x6c3   : > { %v2306_v31 = vpop.eup %2305 }
 0x6c4   : > { %1366 = vperm.xlu1 %2277, %v2306_v31  }
 0x6c7   : > { %v2308_v32 = vpop.eup %2307 }
 0x6c8   : > { %1371 = vperm.xlu0 %2278, %v2308_v32  }
 0x6ed   : > { %v1183_v36 = vpop.f32.mrb[8].mxu1 }
 0x6ee   : > { %v1327_v26 = vadd.f32 %v1183_v36, %v1134_v35  ;;  %v2040_v37 = vpop.f32.mrb[9].mxu1 }
 0x6ef   : > { %v1186_v38 = vpop.f32.mrb[10].mxu1 }
 0x6f0   : > { %1331 = vst.msk [vmem:[#allocation7] sm:$0xff] %vm803_vm2, %v1327_v26  ;;  %v2041_v39 = vpop.f32.mrb[11].mxu1 }
 0x6f7   : > { %v1342_v1 = vld [vmem:[#allocation7] sm:$0xff] }
 0x6f8   : > { %v1229_v45 = vpop.f32.mrb[12].mxu0 }
 0x6f9   : > { %v1328_v46 = vadd.f32 %v1229_v45, %v1135_v42  ;;  %v2046_v47 = vpop.f32.mrb[13].mxu0  ;;  %v1586_v45 = vld [vmem:[%s535_s9] sm:$0xff] }
 0x6fa   : > { %v1232_v48 = vpop.f32.mrb[14].mxu0 }
 0x6fb   : > { %1332 = vst.msk [vmem:[#allocation7 + $0x8] sm:$0xff] %vm803_vm2, %v1328_v46  ;;  %v2047_v50 = vpop.f32.mrb[15].mxu0 }
 0x6fc   : > { %v1275_v53 = vpop.f32.mrb[12].mxu1 }
 0x6fd   : > { %v1329_v54 = vadd.f32 %v1275_v53, %v1136_v49  ;;  %v2052_v55 = vpop.f32.mrb[13].mxu1 }
 0x6fe   : > { %v1278_v56 = vpop.f32.mrb[14].mxu1  ;;  %v2282_v55 = vld [vmem:[#allocation25 + $0x8] sm:$0xff]  }
 0x6ff   : > { %1333 = vst.msk [vmem:[#allocation7 + $0x10] sm:$0xff] %vm803_vm2, %v1329_v54  ;;  %v2053_v58 = vpop.f32.mrb[15].mxu1  ;;  %v2281_v54 = vld [vmem:[#allocation25] sm:$0xff]  }
 0x700   : > { %v1321_v59 = vpop.f32.mrb[16].mxu0 }
 0x701   : > { %v1330_v60 = vadd.f32 %v1321_v59, %v1137_v57  ;;  %v2058_v61 = vpop.f32.mrb[17].mxu0 }
 0x702   : > { %v1324_v62 = vpop.f32.mrb[18].mxu0  ;;  %v1343_v7 = vld [vmem:[#allocation7 + $0x8] sm:$0xff] }
 0x703   : > { %1334 = vst.msk [vmem:[#allocation7 + $0x18] sm:$0xff] %vm803_vm2, %v1330_v60  ;;  %v2059_v63 = vpop.f32.mrb[19].mxu0  ;;  %v1962_v60 = vld [vmem:[#allocation22] ss:$0 sm:$0xff]  ;;  %v1963_v62 = vld [vmem:[#allocation23] ss:$0 sm:$0xff] }
 0x706   : > { %v1344_v13 = vld [vmem:[#allocation7 + $0x10] sm:$0xff] }
 0x70a   : > { %v1345_v18 = vld [vmem:[#allocation7 + $0x18] sm:$0xff] }
 0x73b   : > { %v1357_v0 = vpop.permute.xlu1 %1356 }
 0x73c   : > { %v1374_v3 = vmul.f32 %v1357_v0, %v1342_v1 }
 0x73e   : > { %v1378_v4 = vpack.c.bf16 %v1374_v3, %v1374_v3 }
 0x73f   : > { %v1362_v6 = vpop.permute.xlu0 %1361 }
 0x740   : > { %v1375_v10 = vmul.f32 %v1362_v6, %v1343_v7  ;;  %2063 = vmatmul.mubr.msk.bf16.vlgmr.msra.gmra.mrb[16].mxu1 %vm803_vm2, %v1378_v4 }
 0x741   : > { %2073 = vmatpush3.bf16.msra.mxu1 %v1482_v5  ;;  %2074 = vmatprep.mubr.msk.bf16.mxu1 %vm2778_vm1, %v2777_v8 }
 0x742   : > { %v1379_v11 = vpack.c.bf16 %v1375_v10, %v1375_v10  ;;  %2084 = vmatprep.subr.bf16.mxu1 %v2777_v8 }
 0x743   : > { %v1367_v14 = vpop.permute.xlu1 %1366 }
 0x744   : > { %v1376_v15 = vmul.f32 %v1367_v14, %v1344_v13  ;;  %2069 = vmatmul.mubr.msk.bf16.vlgmr.msra.gmra.mrb[20].mxu0 %vm803_vm2, %v1379_v11 }
 0x745   : > { %2079 = vmatpush3.bf16.msra.mxu0 %v1528_v12  ;;  %2080 = vmatprep.mubr.msk.bf16.mxu0 %vm2778_vm1, %v2777_v8 }
 0x746   : > { %v1380_v16 = vpack.c.bf16 %v1376_v15, %v1376_v15 }
 0x747   : > { %v1372_v17 = vpop.permute.xlu0 %1371 }
 0x748   : > { %v1377_v19 = vmul.f32 %v1372_v17, %v1345_v18  ;;  %2075 = vmatmul.mubr.msk.bf16.vlgmr.msra.gmra.mrb[20].mxu1 %vm803_vm2, %v1380_v16 }
 0x749   : > { %2088 = vmatprep.mubr.msk.bf16.mxu1 %vm2778_vm1, %v2777_v8  ;;  %2085 = vmatpush3.bf16.msra.mxu1 %v2281_v54 }
 0x74a   : > { %v1381_v20 = vpack.c.bf16 %v1377_v19, %v1377_v19  ;;  %2086 = vmatprep.subr.bf16.mxu1 %v2777_v8 }
 0x74c   : > { %2081 = vmatmul.mubr.msk.bf16.vlgmr.msra.gmra.mrb[24].mxu0 %vm803_vm2, %v1381_v20 }
 0x74d   : > { %2087 = vmatpush3.bf16.msra.mxu1 %v2282_v55 }
 0x813   : > { %v1426_v21 = vpop.f32.mrb[16].mxu1 }
 0x814   : > { %v2064_v22 = vpop.f32.mrb[17].mxu1  ;;  %v1571_v27 = vsel %vm631_vm0, %v1426_v21, 0.0 }
 0x815   : > { %v1429_v23 = vpop.f32.mrb[18].mxu1 }
 0x816   : > { %v2065_v24 = vpop.f32.mrb[19].mxu1 }
 0x817   : > { %v1472_v25 = vpop.f32.mrb[20].mxu0 }
 0x818   : > { %v1572_v28 = vsel %vm631_vm0, %v1472_v25, 0.0  ;;  %v2070_v29 = vpop.f32.mrb[21].mxu0 }
 0x819   : > { %v1573_v30 = vadd.f32 %v1572_v28, %v1571_v27  ;;  %v1475_v31 = vpop.f32.mrb[22].mxu0 }
 0x81a   : > { %v2071_v32 = vpop.f32.mrb[23].mxu0 }
 0x81b   : > { %v1518_v33 = vpop.f32.mrb[20].mxu1 }
 0x81c   : > { %v1574_v34 = vsel %vm631_vm0, %v1518_v33, 0.0  ;;  %v2076_v35 = vpop.f32.mrb[21].mxu1 }
 0x81d   : > { %v1575_v36 = vadd.f32 %v1574_v34, %v1573_v30  ;;  %v1521_v26 = vpop.f32.mrb[22].mxu1 }
 0x81e   : > { %v2077_v37 = vpop.f32.mrb[23].mxu1 }
 0x81f   : > { %v1564_v38 = vpop.f32.mrb[24].mxu0 }
 0x820   : > { %v1576_v39 = vsel %vm631_vm0, %v1564_v38, 0.0  ;;  %v2082_v41 = vpop.f32.mrb[25].mxu0 }
 0x821   : > { %v1577_v42 = vadd.f32 %v1576_v39, %v1575_v36  ;;  %v1567_v43 = vpop.f32.mrb[26].mxu0 }
 0x822   : > { %v2083_v44 = vpop.f32.mrb[27].mxu0 }
 0x823   : > { %v1585_v46 = vadd.f32 %v1961_v40, %v1577_v42 }
 0x825   : > { %v1587_v47 = vadd.f32 %v1586_v45, %v1585_v46 }
 0x827   : > { %v1590_v48 = vsel %vm631_vm0, %v1587_v47, 0.0 }
 0x828   : > { %1591 = vadd.xlane.f32.xlu1 %v1590_v48 }
 0x8b5   : > { %v1592_v49 = vpop.xlane.xlu1 %1591 }
 0x8b6   : > { %v1594_v50 = vmul.f32 0.03125, %v1592_v49 }
 0x8b8   : > { %v1595_v51 = vsub.f32 %v1587_v47, %v1594_v50 }
 0x8ba   : > { %v1596_v52 = vmul.f32 %v1595_v51, %v1595_v51 }
 0x8bc   : > { %v1597_v53 = vsel %vm631_vm0, %v1596_v52, 0.0 }
 0x8bd   : > { %1598 = vadd.xlane.f32.xlu0 %v1597_v53 }
 0x94a   : > { %v1599_v56 = vpop.xlane.xlu0 %1598 }
 0x94b   : > { %v1600_v57 = vmul.f32 0.03125, %v1599_v56 }
 0x94d   : > { %v1601_v58 = vadd.f32 1e-06, %v1600_v57 }
 0x94f   : > { %2309 = vrsqrt.f32 %v1601_v58 }
 0x959   : > { %v2310_v59 = vpop.eup %2309 }
 0x95a   : > { %v1603_v61 = vmul.f32 %v2310_v59, %v1595_v51 }
 0x95c   : > { %v1610_v63 = vmul.f32 %v1962_v60, %v1603_v61 }
 0x95e   : > { %v1617_v0 = vadd.f32 %v1963_v62, %v1610_v63 }
 0x960   : > { %v1618_v1 = vpack.c.bf16 %v1617_v0, %v1617_v0 }
 0x962   : > { %2089 = vmatmul.mubr.msk.bf16.vlgmr.msra.gmra.mrb[24].mxu1 %vm631_vm0, %v1618_v1 }
 0xa35   : > { %v1679_v8 = vpop.f32.mrb[24].mxu1 }
 0xa36   : > { %v1680_v3 = vadd.f32 %v1964_v2, %v1679_v8  ;;  %v2090_v4 = vpop.f32.mrb[25].mxu1 }
 0xa37   : > { %v1682_v5 = vpop.f32.mrb[26].mxu1 }
 0xa38   : > { %v1685_v6 = vadd.f32 %v1680_v3, %v1587_v47  ;;  %v2091_v7 = vpop.f32.mrb[27].mxu1 }
 0xa3a   : > { %1686 = vst.msk [vmem:[%s620_s4] sm:$0xff] %vm631_vm0, %v1685_v6 }
 0xa3b   : > { %2664 = shalt.err (!%p2661_p1)
}
 0xa3c   : > { %s2665_s7 = scalar_lea.hbm %s3477_s24, 128  ;;  %s2669_s13 = scalar_lea.hbm %s3593_s16, 256 }
 0xa3d   : > { %p2666_p6 = scmp.ne.s32.totalorder %s3477_s24, %s2665_s7  ;;  %p2670_p0 = scmp.lt.u32.totalorder %s3477_s24, %s3593_s16 }
 0xa3e   : > { %p2671_p10 = scmp.lt.u32.totalorder %s2669_s13, %s2665_s7  ;;  %p2673_p4 = scmp.lt.u32.totalorder %s2665_s7, %s3477_s24 }
 0xa3f   : > { %p2667_p3 = pnand %p2666_p6, %p3594_p11 }
 0xa40   : > { %p2672_p13 = por %p2671_p10, %p2670_p0 }
 0xa41   : > { %p2668_p12 = pneg %p2667_p3 }
 0xa42   : > { %p2674_p5 = por %p2673_p4, %p2672_p13 }
 0xa44   : > { %p2675_p7 = pnand %p2674_p5, %p2668_p12 }
 0xa46   : > { %2678 = shalt.err (!%p2675_p7)
}
 0xa47   : > { %2136 = dma.vmem_to_hbm [thread:$0]  (%p3594_p11), %s3479_s15, 128, %s3477_s24, %s1688_s3  }
 0xa48 PF: > { %s1714_s20 = sand.u32 1, %s2741_s21   ;;  %p3595_p2 = scmp.ne.s32.totalorder %s3574_s12, 0 }
 0xa49   : > { %p3596_p8 = scmp.ge.s32.totalorder %s2761_s26, 2  ;;  %s1715_s4 = scalar_lea.sflag [#allocation10], %s1714_s20 }
 0xa4b   : > { %p2177_p9 = pnand %p3596_p8, %p3595_p2 }
 0xa4d   : > { %2736 = dma.done.wait (!%p2177_p9), %s1715_s4, 128  }
 0xa4e   : > { %2738 = vsyncadd (!%p2177_p9), %s1715_s4, 4294967168  ;;  %s36_s26 = sadd.s32 1, %s2761_s26   ;;  %s3597_s21 = smov %s2745_s22 }
 0xa4f   : > { %p33_p1 = scmp.ge.s32.totalorder %s36_s26, 4   ;;  %s3598_s22 = smov %s2749_s23 }
 0xa50   : > { %s3599_s23 = smov %s3162_s2  ;;  %s3600_s24 = smov %s2757_s25 }
 0xa51   : > { %s3601_s25 = smov %s3603_s30  ;;  %35 = sbr.rel (!%p33_p1) target bundleno = 24 (0x18), region = 190 }
 0xa58   :  { %1720 = vsyncpa [#allocation9], 1 }
 0xa59   :  { %1722 = vsyncpa [#allocation9 + $0x1], 1 }
 0xa5a   :  { %1723 = vsyncpa [#allocation12], 1 }
 0xa5b   :  { %1725 = vsyncpa [#allocation12 + $0x1], 1 }
 0xa5c   :  { %1726 = vsyncpa [#allocation15], 1 }
 0xa5d   :  { %1727 = vsyncpa [#allocation18], 1 }
 0xa5e   :  { %1728 = vsyncpa [#allocation21], 1 }
 0xa5f   :  { %1729 = vsyncpa [#allocation24], 1 }
 0xa60   :  { %1730 = vsyncpa [#allocation27], 1 }
 0xa61   :  { %1731 = vsyncpa [#allocation10], 1 }
 0xa62   :  { %1733 = vsyncpa [#allocation10 + $0x1], 1 }

</bundles_post_ra>
